<compile_context>
chip_gen: v7x
topology: tpu7x:2x2x1
jax: 0.10.0
libtpu: 0.0.40
codegen_flags: <defaults>
</compile_context>

<pallas_src>
import functools

import jax
import jax.numpy as jnp
from jax import lax
from jax.experimental import pallas as pl
from jax.experimental.pallas import tpu as pltpu


# ------------------------------- fused kernel --------------------------------

def _fused_kernel(xcat_ref, x3_ref,
                  w1_ref, b1_ref, w2_ref, b2_ref, w3_ref, b3_ref, w4_ref,
                  out_ref, *, H, W):
    f32 = jnp.float32
    HW = H * W
    planes = w1_ref.shape[0]

    # ---- conv1 (1x1) + folded bn1 + relu -------------------------------------
    y = jnp.dot(w1_ref[...], xcat_ref[...], preferred_element_type=f32)
    out1 = jnp.maximum(y + b1_ref[...], 0.0)                  # (planes, HW) f32

    # ---- boundary masks for in-kernel replicate padding (built once) ---------
    lane = lax.broadcasted_iota(jnp.int32, (planes, HW), 1)   # p = h*W + w
    col = lane % W
    first_col = col == 0
    last_col = col == W - 1
    first_row = lane < W
    last_row = lane >= HW - W

    def conv3x3_bn_relu(x, w_ref, b_ref, residual=None):
        # x: (planes, HW).  Shifted taps via XLU roll + replicate-edge select:
        # roll(x, s)[p] = x[(p - s) mod HW]; replicate fix = select x itself at
        # the clamped boundary rows/cols.  Taps stacked along sublanes in
        # (ky, kx) row-major order to match the wrapper's weight reshape, then
        # a single (planes, 9*planes) @ (9*planes, HW) MXU matmul.
        xl = jnp.where(first_col, x, pltpu.roll(x, shift=1, axis=1))       # dx=-1
        xr = jnp.where(last_col, x, pltpu.roll(x, shift=HW - 1, axis=1))   # dx=+1
        cols = (xl, x, xr)                                                 # by kx
        taps = []
        for ky in range(3):
            for kx in range(3):
                cx = cols[kx]
                if ky == 0:      # dy = -1
                    t = jnp.where(first_row, cx, pltpu.roll(cx, shift=W, axis=1))
                elif ky == 2:    # dy = +1
                    t = jnp.where(last_row, cx, pltpu.roll(cx, shift=HW - W, axis=1))
                else:            # dy = 0
                    t = cx
                taps.append(t)
        s = jnp.concatenate(taps, axis=0)                     # (9*planes, HW)
        y = jnp.dot(w_ref[...], s, preferred_element_type=f32) + b_ref[...]
        if residual is not None:
            y = y + residual
        return jnp.maximum(y, 0.0)

    # conv2 + bn2 + relu (drop2 = identity in eval)
    out2 = conv3x3_bn_relu(out1, w2_ref, b2_ref)
    # conv3 + bn3 + residual(out1) + relu (drop3 = identity in eval)
    out3 = conv3x3_bn_relu(out2, w3_ref, b3_ref, residual=out1)

    # ---- conv4 (1x1) + x3 residual; lane-dense (nclasses, HW) store ----------
    y4 = jnp.dot(w4_ref[...], out3, preferred_element_type=f32)
    out_ref[...] = (y4 + x3_ref[...]).astype(out_ref.dtype)


# ------------------------------ model forward ---------------------------------

@jax.jit
def model_forward(params, x1, x2, x3):
    # inputs are NCHW (PyTorch convention)
    N, C1, H, W = x1.shape
    C2 = x2.shape[1]
    C3 = x3.shape[1]
    HW = H * W
    planes = params['w2'].shape[-1]

    # ---- fold BN scales into conv weights; build kernel-friendly layouts -----
    s1 = params['bn1_scale'].reshape(-1)
    w1 = (params['w1'][0, 0] * s1[None, :]).T                 # (planes, Cin_total)
    b1 = params['bn1_bias'].reshape(planes, 1)

    s2 = params['bn2_scale'].reshape(-1)
    w2s = jnp.transpose(params['w2'] * s2[None, None, None, :],
                        (3, 0, 1, 2)).reshape(planes, 9 * planes)   # (out, ky*kx*in)
    b2 = params['bn2_bias'].reshape(planes, 1)

    s3 = params['bn3_scale'].reshape(-1)
    w3s = jnp.transpose(params['w3'] * s3[None, None, None, :],
                        (3, 0, 1, 2)).reshape(planes, 9 * planes)
    b3 = params['bn3_bias'].reshape(planes, 1)

    w4 = params['w4'][0, 0].T                                 # (nclasses, planes)
    nclasses = w4.shape[0]

    # collapse (H, W) -> HW (free trailing reshape) and do the tiny channel
    # concat once here so conv1 is a single MXU dot in the kernel.
    xcat = jnp.concatenate(
        [x1.reshape(N, C1, HW), x2.reshape(N, C2, HW), x3.reshape(N, C3, HW)],
        axis=1)                                               # (N, Cin_total, HW)
    x3r = x3.reshape(N, C3, HW)
    cin = C1 + C2 + C3

    out = pl.pallas_call(
        functools.partial(_fused_kernel, H=H, W=W),
        out_shape=jax.ShapeDtypeStruct((N, nclasses, HW), jnp.float32),
        grid=(N,),
        in_specs=[
            pl.BlockSpec((None, cin, HW), lambda n: (n, 0, 0)),
            pl.BlockSpec((None, C3, HW), lambda n: (n, 0, 0)),
            pl.BlockSpec((planes, cin), lambda n: (0, 0)),
            pl.BlockSpec((planes, 1), lambda n: (0, 0)),
            pl.BlockSpec((planes, 9 * planes), lambda n: (0, 0)),
            pl.BlockSpec((planes, 1), lambda n: (0, 0)),
            pl.BlockSpec((planes, 9 * planes), lambda n: (0, 0)),
            pl.BlockSpec((planes, 1), lambda n: (0, 0)),
            pl.BlockSpec((nclasses, planes), lambda n: (0, 0)),
        ],
        out_specs=pl.BlockSpec((None, nclasses, HW), lambda n: (n, 0, 0)),
        compiler_params=pltpu.CompilerParams(
            dimension_semantics=("parallel",)),
    )(xcat, x3r, w1, b1, w2s, b2, w3s, b3, w4)

    return out.reshape(N, nclasses, H, W)                     # already NCHW


# ------------------------------ parameters ------------------------------------

def _fold_bn(gamma, beta, mean, var, eps=1e-5):
    scale = gamma / jnp.sqrt(var + eps)
    bias = beta - mean * scale
    return scale.reshape(1, -1), bias.reshape(1, -1)


def init_params(key, input_dim, planes, nclasses):
    ks = jax.random.split(key, 8)

    def w_init(k, shape, fan_in):
        return jax.random.normal(k, shape, jnp.float32) / jnp.sqrt(fan_in)

    def bn_init(k, c):
        k1, k2, k3, k4 = jax.random.split(k, 4)
        gamma = 1.0 + 0.1 * jax.random.normal(k1, (c,), jnp.float32)
        beta = 0.1 * jax.random.normal(k2, (c,), jnp.float32)
        mean = 0.1 * jax.random.normal(k3, (c,), jnp.float32)
        var = 1.0 + 0.1 * jax.random.uniform(k4, (c,), jnp.float32)
        return _fold_bn(gamma, beta, mean, var)

    p = {}
    p['w1'] = w_init(ks[0], (1, 1, input_dim, planes), input_dim)   # HWIO
    p['w2'] = w_init(ks[1], (3, 3, planes, planes), 9 * planes)
    p['w3'] = w_init(ks[2], (3, 3, planes, planes), 9 * planes)
    p['w4'] = w_init(ks[3], (1, 1, planes, nclasses), planes)
    p['bn1_scale'], p['bn1_bias'] = bn_init(ks[4], planes)
    p['bn2_scale'], p['bn2_bias'] = bn_init(ks[5], planes)
    p['bn3_scale'], p['bn3_bias'] = bn_init(ks[6], planes)
    return p


# ------------------------------ pure-JAX reference ----------------------------

def ref_forward(params, x1, x2, x3):
    xcat = jnp.concatenate([x1, x2, x3], axis=1)            # NCHW

    def conv(x, w_hwio, replicate_pad):
        if replicate_pad:
            x = jnp.pad(x, ((0, 0), (0, 0), (1, 1), (1, 1)), mode='edge')
        return lax.conv_general_dilated(
            x, w_hwio, (1, 1), 'VALID',
            dimension_numbers=('NCHW', 'HWIO', 'NCHW'))

    def bn(x, scale, bias):
        return x * scale.reshape(1, -1, 1, 1) + bias.reshape(1, -1, 1, 1)

    out1 = jax.nn.relu(bn(conv(xcat, params['w1'], False),
                          params['bn1_scale'], params['bn1_bias']))
    out = jax.nn.relu(bn(conv(out1, params['w2'], True),
                         params['bn2_scale'], params['bn2_bias']))
    out = bn(conv(out, params['w3'], True),
             params['bn3_scale'], params['bn3_bias']) + out1
    out = jax.nn.relu(out)
    out = conv(out, params['w4'], False) + x3
    return out


# ---------------------------------- main --------------------------------------

if __name__ == "__main__":
    key = jax.random.PRNGKey(0)
    N, H, W = 2, 16, 16
    nclasses, num_l1, num_l2, planes = 8, 4, 4, 32
    input_dim = nclasses + num_l1 + num_l2          # padding=False branch

    kx1, kx2, kx3, kp = jax.random.split(key, 4)
    x1 = jax.random.normal(kx1, (N, num_l1, H, W), jnp.float32)
    x2 = jax.random.normal(kx2, (N, num_l2, H, W), jnp.float32)
    x3 = jax.random.normal(kx3, (N, nclasses, H, W), jnp.float32)

    params = init_params(kp, input_dim, planes, nclasses)

    out = jax.block_until_ready(model_forward(params, x1, x2, x3))
    ref = jax.block_until_ready(ref_forward(params, x1, x2, x3))

    assert out.shape == (N, nclasses, H, W), out.shape
    assert jnp.allclose(out, ref, rtol=2e-4, atol=2e-4), \
        float(jnp.max(jnp.abs(out - ref)))
    print("KERNEL_OK")
</pallas_src>

<mosaic_0001>
module attributes {stable_mosaic.version = 11 : i64} {
  func.func @_fused_kernel(%arg0: i32, %arg1: memref<1x16x256xf32, #tpu.memory_space<vmem>>, %arg2: memref<1x8x256xf32, #tpu.memory_space<vmem>>, %arg3: memref<32x16xf32, #tpu.memory_space<vmem>>, %arg4: memref<32x1xf32, #tpu.memory_space<vmem>>, %arg5: memref<32x288xf32, #tpu.memory_space<vmem>>, %arg6: memref<32x1xf32, #tpu.memory_space<vmem>>, %arg7: memref<32x288xf32, #tpu.memory_space<vmem>>, %arg8: memref<32x1xf32, #tpu.memory_space<vmem>>, %arg9: memref<8x32xf32, #tpu.memory_space<vmem>>, %arg10: memref<1x8x256xf32, #tpu.memory_space<vmem>>) attributes {dimension_semantics = [#tpu.dimension_semantics<parallel>], iteration_bounds = array<i64: 2>, scalar_prefetch = 0 : i64, scratch_operands = 0 : i64, tpu.core_type = #tpu.core_type<tc>, window_params = [{transform_indices = @transform_0, window_bounds = array<i64: 1, 16, 256>}, {transform_indices = @transform_1, window_bounds = array<i64: 1, 8, 256>}, {pipeline_mode = #tpu.pipeline_mode<synchronous>, transform_indices = @transform_2, window_bounds = array<i64: 32, 16>}, {pipeline_mode = #tpu.pipeline_mode<synchronous>, transform_indices = @transform_3, window_bounds = array<i64: 32, 1>}, {pipeline_mode = #tpu.pipeline_mode<synchronous>, transform_indices = @transform_4, window_bounds = array<i64: 32, 288>}, {pipeline_mode = #tpu.pipeline_mode<synchronous>, transform_indices = @transform_5, window_bounds = array<i64: 32, 1>}, {pipeline_mode = #tpu.pipeline_mode<synchronous>, transform_indices = @transform_6, window_bounds = array<i64: 32, 288>}, {pipeline_mode = #tpu.pipeline_mode<synchronous>, transform_indices = @transform_7, window_bounds = array<i64: 32, 1>}, {pipeline_mode = #tpu.pipeline_mode<synchronous>, transform_indices = @transform_8, window_bounds = array<i64: 8, 32>}, {transform_indices = @transform_9, window_bounds = array<i64: 1, 8, 256>}]} {
    %c0 = arith.constant 0 : index
    %c0_0 = arith.constant 0 : index
    %0 = vector.load %arg3[%c0, %c0_0] : memref<32x16xf32, #tpu.memory_space<vmem>>, vector<32x16xf32>
    %c0_1 = arith.constant 0 : index
    %c0_2 = arith.constant 0 : index
    %c0_3 = arith.constant 0 : index
    %1 = vector.load %arg1[%c0_1, %c0_2, %c0_3] : memref<1x16x256xf32, #tpu.memory_space<vmem>>, vector<1x16x256xf32>
    %2 = vector.shape_cast %1 : vector<1x16x256xf32> to vector<16x256xf32>
    %cst = arith.constant dense<0.000000e+00> : vector<32x256xf32>
    %3 = tpu.matmul %0, %2, %cst {dimension_numbers = #tpu.dot_dimension_numbers<[1], [0], [0], [1], [0, 0, 1, 1], [], []>} : vector<32x16xf32>, vector<16x256xf32>, vector<32x256xf32> -> vector<32x256xf32>
    %c0_4 = arith.constant 0 : index
    %c0_5 = arith.constant 0 : index
    %4 = vector.load %arg4[%c0_4, %c0_5] : memref<32x1xf32, #tpu.memory_space<vmem>>, vector<32x1xf32>
    %5 = vector.broadcast %4 : vector<32x1xf32> to vector<32x256xf32>
    %6 = arith.addf %3, %5 : vector<32x256xf32>
    %cst_6 = arith.constant 0.000000e+00 : f32
    %7 = vector.broadcast %cst_6 : f32 to vector<32x256xf32>
    %8 = arith.maximumf %6, %7 : vector<32x256xf32>
    %9 = tpu.iota {dimensions = array<i32: 1>} : vector<32x256xi32>
    %c16_i32 = arith.constant 16 : i32
    %c0_i32 = arith.constant 0 : i32
    %10 = arith.cmpi eq, %c16_i32, %c0_i32 : i32
    %c1_i32 = arith.constant 1 : i32
    %11 = arith.select %10, %c1_i32, %c16_i32 : i32
    %12 = vector.broadcast %11 : i32 to vector<32x256xi32>
    %13 = arith.remsi %9, %12 : vector<32x256xi32>
    %c0_i32_7 = arith.constant 0 : i32
    %14 = vector.broadcast %c0_i32_7 : i32 to vector<32x256xi32>
    %15 = arith.cmpi ne, %13, %14 : vector<32x256xi32>
    %c0_i32_8 = arith.constant 0 : i32
    %16 = vector.broadcast %c0_i32_8 : i32 to vector<32x256xi32>
    %17 = arith.cmpi slt, %13, %16 : vector<32x256xi32>
    %c0_i32_9 = arith.constant 0 : i32
    %18 = arith.cmpi slt, %11, %c0_i32_9 : i32
    %19 = vector.broadcast %18 : i1 to vector<32x256xi1>
    %20 = vector.broadcast %19 : vector<32x256xi1> to vector<32x256xi1>
    %21 = arith.xori %17, %20 : vector<32x256xi1>
    %22 = arith.andi %21, %15 : vector<32x256xi1>
    %23 = vector.broadcast %11 : i32 to vector<32x256xi32>
    %24 = arith.addi %13, %23 : vector<32x256xi32>
    %25 = arith.select %22, %24, %13 : vector<32x256xi1>, vector<32x256xi32>
    %c0_i32_10 = arith.constant 0 : i32
    %26 = vector.broadcast %c0_i32_10 : i32 to vector<32x256xi32>
    %27 = arith.cmpi eq, %25, %26 : vector<32x256xi32>
    %c15_i32 = arith.constant 15 : i32
    %28 = vector.broadcast %c15_i32 : i32 to vector<32x256xi32>
    %29 = arith.cmpi eq, %25, %28 : vector<32x256xi32>
    %c16_i32_11 = arith.constant 16 : i32
    %30 = vector.broadcast %c16_i32_11 : i32 to vector<32x256xi32>
    %31 = arith.cmpi slt, %9, %30 : vector<32x256xi32>
    %c240_i32 = arith.constant 240 : i32
    %32 = vector.broadcast %c240_i32 : i32 to vector<32x256xi32>
    %33 = arith.cmpi sge, %9, %32 : vector<32x256xi32>
    %c1_i32_12 = arith.constant 1 : i32
    %34 = tpu.dynamic_rotate %8 by %c1_i32_12 dim 1 : vector<32x256xf32>, i32 -> vector<32x256xf32>
    %35 = arith.select %27, %8, %34 : vector<32x256xi1>, vector<32x256xf32>
    %c255_i32 = arith.constant 255 : i32
    %36 = tpu.dynamic_rotate %8 by %c255_i32 dim 1 : vector<32x256xf32>, i32 -> vector<32x256xf32>
    %37 = arith.select %29, %8, %36 : vector<32x256xi1>, vector<32x256xf32>
    %c16_i32_13 = arith.constant 16 : i32
    %38 = tpu.dynamic_rotate %35 by %c16_i32_13 dim 1 : vector<32x256xf32>, i32 -> vector<32x256xf32>
    %39 = arith.select %31, %35, %38 : vector<32x256xi1>, vector<32x256xf32>
    %c16_i32_14 = arith.constant 16 : i32
    %40 = tpu.dynamic_rotate %8 by %c16_i32_14 dim 1 : vector<32x256xf32>, i32 -> vector<32x256xf32>
    %41 = arith.select %31, %8, %40 : vector<32x256xi1>, vector<32x256xf32>
    %c16_i32_15 = arith.constant 16 : i32
    %42 = tpu.dynamic_rotate %37 by %c16_i32_15 dim 1 : vector<32x256xf32>, i32 -> vector<32x256xf32>
    %43 = arith.select %31, %37, %42 : vector<32x256xi1>, vector<32x256xf32>
    %c240_i32_16 = arith.constant 240 : i32
    %44 = tpu.dynamic_rotate %35 by %c240_i32_16 dim 1 : vector<32x256xf32>, i32 -> vector<32x256xf32>
    %45 = arith.select %33, %35, %44 : vector<32x256xi1>, vector<32x256xf32>
    %c240_i32_17 = arith.constant 240 : i32
    %46 = tpu.dynamic_rotate %8 by %c240_i32_17 dim 1 : vector<32x256xf32>, i32 -> vector<32x256xf32>
    %47 = arith.select %33, %8, %46 : vector<32x256xi1>, vector<32x256xf32>
    %c240_i32_18 = arith.constant 240 : i32
    %48 = tpu.dynamic_rotate %37 by %c240_i32_18 dim 1 : vector<32x256xf32>, i32 -> vector<32x256xf32>
    %49 = arith.select %33, %37, %48 : vector<32x256xi1>, vector<32x256xf32>
    %50 = tpu.concatenate %39, %41, %43, %35, %8, %37, %45, %47, %49 in 0 : vector<32x256xf32>, vector<32x256xf32>, vector<32x256xf32>, vector<32x256xf32>, vector<32x256xf32>, vector<32x256xf32>, vector<32x256xf32>, vector<32x256xf32>, vector<32x256xf32> -> vector<288x256xf32>
    %c0_19 = arith.constant 0 : index
    %c0_20 = arith.constant 0 : index
    %51 = vector.load %arg5[%c0_19, %c0_20] : memref<32x288xf32, #tpu.memory_space<vmem>>, vector<32x288xf32>
    %cst_21 = arith.constant dense<0.000000e+00> : vector<32x256xf32>
    %52 = tpu.matmul %51, %50, %cst_21 {dimension_numbers = #tpu.dot_dimension_numbers<[1], [0], [0], [1], [0, 0, 1, 1], [], []>} : vector<32x288xf32>, vector<288x256xf32>, vector<32x256xf32> -> vector<32x256xf32>
    %c0_22 = arith.constant 0 : index
    %c0_23 = arith.constant 0 : index
    %53 = vector.load %arg6[%c0_22, %c0_23] : memref<32x1xf32, #tpu.memory_space<vmem>>, vector<32x1xf32>
    %54 = vector.broadcast %53 : vector<32x1xf32> to vector<32x256xf32>
    %55 = arith.addf %52, %54 : vector<32x256xf32>
    %cst_24 = arith.constant 0.000000e+00 : f32
    %56 = vector.broadcast %cst_24 : f32 to vector<32x256xf32>
    %57 = arith.maximumf %55, %56 : vector<32x256xf32>
    %c1_i32_25 = arith.constant 1 : i32
    %58 = tpu.dynamic_rotate %57 by %c1_i32_25 dim 1 : vector<32x256xf32>, i32 -> vector<32x256xf32>
    %59 = arith.select %27, %57, %58 : vector<32x256xi1>, vector<32x256xf32>
    %c255_i32_26 = arith.constant 255 : i32
    %60 = tpu.dynamic_rotate %57 by %c255_i32_26 dim 1 : vector<32x256xf32>, i32 -> vector<32x256xf32>
    %61 = arith.select %29, %57, %60 : vector<32x256xi1>, vector<32x256xf32>
    %c16_i32_27 = arith.constant 16 : i32
    %62 = tpu.dynamic_rotate %59 by %c16_i32_27 dim 1 : vector<32x256xf32>, i32 -> vector<32x256xf32>
    %63 = arith.select %31, %59, %62 : vector<32x256xi1>, vector<32x256xf32>
    %c16_i32_28 = arith.constant 16 : i32
    %64 = tpu.dynamic_rotate %57 by %c16_i32_28 dim 1 : vector<32x256xf32>, i32 -> vector<32x256xf32>
    %65 = arith.select %31, %57, %64 : vector<32x256xi1>, vector<32x256xf32>
    %c16_i32_29 = arith.constant 16 : i32
    %66 = tpu.dynamic_rotate %61 by %c16_i32_29 dim 1 : vector<32x256xf32>, i32 -> vector<32x256xf32>
    %67 = arith.select %31, %61, %66 : vector<32x256xi1>, vector<32x256xf32>
    %c240_i32_30 = arith.constant 240 : i32
    %68 = tpu.dynamic_rotate %59 by %c240_i32_30 dim 1 : vector<32x256xf32>, i32 -> vector<32x256xf32>
    %69 = arith.select %33, %59, %68 : vector<32x256xi1>, vector<32x256xf32>
    %c240_i32_31 = arith.constant 240 : i32
    %70 = tpu.dynamic_rotate %57 by %c240_i32_31 dim 1 : vector<32x256xf32>, i32 -> vector<32x256xf32>
    %71 = arith.select %33, %57, %70 : vector<32x256xi1>, vector<32x256xf32>
    %c240_i32_32 = arith.constant 240 : i32
    %72 = tpu.dynamic_rotate %61 by %c240_i32_32 dim 1 : vector<32x256xf32>, i32 -> vector<32x256xf32>
    %73 = arith.select %33, %61, %72 : vector<32x256xi1>, vector<32x256xf32>
    %74 = tpu.concatenate %63, %65, %67, %59, %57, %61, %69, %71, %73 in 0 : vector<32x256xf32>, vector<32x256xf32>, vector<32x256xf32>, vector<32x256xf32>, vector<32x256xf32>, vector<32x256xf32>, vector<32x256xf32>, vector<32x256xf32>, vector<32x256xf32> -> vector<288x256xf32>
    %c0_33 = arith.constant 0 : index
    %c0_34 = arith.constant 0 : index
    %75 = vector.load %arg7[%c0_33, %c0_34] : memref<32x288xf32, #tpu.memory_space<vmem>>, vector<32x288xf32>
    %cst_35 = arith.constant dense<0.000000e+00> : vector<32x256xf32>
    %76 = tpu.matmul %75, %74, %cst_35 {dimension_numbers = #tpu.dot_dimension_numbers<[1], [0], [0], [1], [0, 0, 1, 1], [], []>} : vector<32x288xf32>, vector<288x256xf32>, vector<32x256xf32> -> vector<32x256xf32>
    %c0_36 = arith.constant 0 : index
    %c0_37 = arith.constant 0 : index
    %77 = vector.load %arg8[%c0_36, %c0_37] : memref<32x1xf32, #tpu.memory_space<vmem>>, vector<32x1xf32>
    %78 = vector.broadcast %77 : vector<32x1xf32> to vector<32x256xf32>
    %79 = arith.addf %76, %78 : vector<32x256xf32>
    %80 = arith.addf %79, %8 : vector<32x256xf32>
    %cst_38 = arith.constant 0.000000e+00 : f32
    %81 = vector.broadcast %cst_38 : f32 to vector<32x256xf32>
    %82 = arith.maximumf %80, %81 : vector<32x256xf32>
    %c0_39 = arith.constant 0 : index
    %c0_40 = arith.constant 0 : index
    %83 = vector.load %arg9[%c0_39, %c0_40] : memref<8x32xf32, #tpu.memory_space<vmem>>, vector<8x32xf32>
    %cst_41 = arith.constant dense<0.000000e+00> : vector<8x256xf32>
    %84 = tpu.matmul %83, %82, %cst_41 {dimension_numbers = #tpu.dot_dimension_numbers<[1], [0], [0], [1], [0, 0, 1, 1], [], []>} : vector<8x32xf32>, vector<32x256xf32>, vector<8x256xf32> -> vector<8x256xf32>
    %c0_42 = arith.constant 0 : index
    %c0_43 = arith.constant 0 : index
    %c0_44 = arith.constant 0 : index
    %85 = vector.load %arg2[%c0_42, %c0_43, %c0_44] : memref<1x8x256xf32, #tpu.memory_space<vmem>>, vector<1x8x256xf32>
    %86 = vector.shape_cast %85 : vector<1x8x256xf32> to vector<8x256xf32>
    %87 = arith.addf %84, %86 : vector<8x256xf32>
    %c0_45 = arith.constant 0 : index
    %c0_46 = arith.constant 0 : index
    %c0_47 = arith.constant 0 : index
    %88 = vector.load %arg10[%c0_45, %c0_46, %c0_47] : memref<1x8x256xf32, #tpu.memory_space<vmem>>, vector<1x8x256xf32>
    %89 = vector.shape_cast %88 : vector<1x8x256xf32> to vector<8x256xf32>
    %90 = vector.shape_cast %87 : vector<8x256xf32> to vector<1x8x256xf32>
    tpu.vector_store %arg10[%c0_45, %c0_46, %c0_47], %90 {strides = array<i32>} : memref<1x8x256xf32, #tpu.memory_space<vmem>>, vector<1x8x256xf32>,
    return
  }
  func.func @transform_0(%arg0: i32) -> (i32, i32, i32) {
    %c0_i32 = arith.constant 0 : i32
    %c0_i32_0 = arith.constant 0 : i32
    %c0_i32_1 = arith.constant 0 : i32
    return %arg0, %c0_i32, %c0_i32_0 : i32, i32, i32
  }
  func.func @transform_1(%arg0: i32) -> (i32, i32, i32) {
    %c0_i32 = arith.constant 0 : i32
    %c0_i32_0 = arith.constant 0 : i32
    %c0_i32_1 = arith.constant 0 : i32
    return %arg0, %c0_i32, %c0_i32_0 : i32, i32, i32
  }
  func.func @transform_2(%arg0: i32) -> (i32, i32) {
    %c0_i32 = arith.constant 0 : i32
    %c0_i32_0 = arith.constant 0 : i32
    %c0_i32_1 = arith.constant 0 : i32
    return %c0_i32, %c0_i32_0 : i32, i32
  }
  func.func @transform_3(%arg0: i32) -> (i32, i32) {
    %c0_i32 = arith.constant 0 : i32
    %c0_i32_0 = arith.constant 0 : i32
    %c0_i32_1 = arith.constant 0 : i32
    return %c0_i32, %c0_i32_0 : i32, i32
  }
  func.func @transform_4(%arg0: i32) -> (i32, i32) {
    %c0_i32 = arith.constant 0 : i32
    %c0_i32_0 = arith.constant 0 : i32
    %c0_i32_1 = arith.constant 0 : i32
    return %c0_i32, %c0_i32_0 : i32, i32
  }
  func.func @transform_5(%arg0: i32) -> (i32, i32) {
    %c0_i32 = arith.constant 0 : i32
    %c0_i32_0 = arith.constant 0 : i32
    %c0_i32_1 = arith.constant 0 : i32
    return %c0_i32, %c0_i32_0 : i32, i32
  }
  func.func @transform_6(%arg0: i32) -> (i32, i32) {
    %c0_i32 = arith.constant 0 : i32
    %c0_i32_0 = arith.constant 0 : i32
    %c0_i32_1 = arith.constant 0 : i32
    return %c0_i32, %c0_i32_0 : i32, i32
  }
  func.func @transform_7(%arg0: i32) -> (i32, i32) {
    %c0_i32 = arith.constant 0 : i32
    %c0_i32_0 = arith.constant 0 : i32
    %c0_i32_1 = arith.constant 0 : i32
    return %c0_i32, %c0_i32_0 : i32, i32
  }
  func.func @transform_8(%arg0: i32) -> (i32, i32) {
    %c0_i32 = arith.constant 0 : i32
    %c0_i32_0 = arith.constant 0 : i32
    %c0_i32_1 = arith.constant 0 : i32
    return %c0_i32, %c0_i32_0 : i32, i32
  }
  func.func @transform_9(%arg0: i32) -> (i32, i32, i32) {
    %c0_i32 = arith.constant 0 : i32
    %c0_i32_0 = arith.constant 0 : i32
    %c0_i32_1 = arith.constant 0 : i32
    return %arg0, %c0_i32, %c0_i32_0 : i32, i32, i32
  }
}

</mosaic_0001>

<bundles_post_ra>
// kernel: model_forward.1
= control target key start
LH: loop header
LB: loop body
LE: loop exit
PB: predicated region body
PF: predicated region fallthrough
CT: control target
= control target key end

     0   :  { %s2285_s30 = smov 0   ;;  %s3334_s0 = inlined_call_operand.vmem [shape: f32[2,16,256], index: 0, kind: input, shape index: {}]   ;;  %s3335_s1 = inlined_call_operand.vmem [shape: f32[2,8,256], index: 1, kind: input, shape index: {}]   ;;  %s3336_s2 = inlined_call_operand.vmem [shape: f32[32,16], index: 2, kind: input, shape index: {}]   ;;  %s3337_s3 = inlined_call_operand.vmem [shape: f32[32,1], index: 3, kind: input, shape index: {}]   ;;  %s3338_s4 = inlined_call_operand.vmem [shape: f32[32,288], index: 4, kind: input, shape index: {}]   ;;  %s3339_s5 = inlined_call_operand.vmem [shape: f32[32,1], index: 5, kind: input, shape index: {}]   ;;  %s3340_s6 = inlined_call_operand.vmem [shape: f32[32,288], index: 6, kind: input, shape index: {}]   ;;  %s3341_s7 = inlined_call_operand.vmem [shape: f32[32,1], index: 7, kind: input, shape index: {}]   ;;  %s3342_s8 = inlined_call_operand.vmem [shape: f32[8,32], index: 8, kind: input, shape index: {}]   ;;  %s3343_s9 = inlined_call_operand.vmem [shape: f32[2,8,256], index: 9, kind: output, shape index: {}]  }
   0x1 LB: > { %s1668_s10 = sadd.s32 4294967295, %s2227_s30   ;;  %p1672_p0 = scmp.ge.s32.totalorder %s2227_s30, 1  ;;  %s2227_s30 = sphi %s2285_s30, %s19_s30  }
   0x2   : > { %p297_p1 = scmp.lt.s32.totalorder %s2227_s30, 3 }
   0x4   : > { %p298_p2 = pnand %p1672_p0, %p297_p1 }
   0x5   : > { %p338_p3 = scmp.lt.s32.totalorder (!%p298_p2), %s1668_s10, 1  ;;  %v2229_v0 = vmov (!%p298_p2), 0.0   ;;  %v361_v1 = vld [vmem:[%s3337_s3] sm:$0xff] (!%p298_p2)  ;;  %v2230_v2 = vmov (!%p298_p2), 0   ;;  %v363_v3 = vld [vmem:[%s3337_s3 + $0x10] sm:$0xff] (!%p298_p2)  ;;  %v362_v4 = vld [vmem:[%s3337_s3 + $0x8] sm:$0xff] (!%p298_p2)  ;;  %v495_v48 = vlaneseq (!%p298_p2) }
   0x6   : > { %301 = sbr.rel (%p298_p2) target bundleno = 1578 (0x62a), region = 56  ;;  %462 = vmatprep.mubr.f32.mxu0 (!%p298_p2), %v2229_v0  ;;  %1899 = vset.pattern.permute.xlu0 (!%p298_p2), %v2230_v2  ;;  %v364_v5 = vld [vmem:[%s3337_s3 + $0x18] sm:$0xff] (!%p298_p2)  ;;  %v353_v12 = vld [vmem:[%s3336_s2] sm:$0xff] (!%p298_p2)  ;;  %vm385_vm0 = vcmask (!%p298_p2), 130048   ;;  %v354_v13 = vld [vmem:[%s3336_s2 + $0x8] sm:$0xff] (!%p298_p2)  ;;  %s2231_s12 = smov (!%p298_p2), 1  }
   0x7   : > { %1900 = vset.pattern.permute.xlu1 (!%p298_p2), %v2230_v2  ;;  %367 = vperm.xlu0 (!%p298_p2), %1899, %v361_v1   ;;  %v355_v14 = vld [vmem:[%s3336_s2 + $0x10] sm:$0xff] (!%p298_p2)  ;;  %v356_v15 = vld [vmem:[%s3336_s2 + $0x18] sm:$0xff] (!%p298_p2)  ;;  %s2232_s13 = smov (!%p298_p2), 127   ;;  %v2375_v49 = vand.u32 (!%p298_p2), 127, %v495_v48  ;;  %s2233_s14 = smov (!%p298_p2), 16   ;;  %vm825_vm10 = vcmask (!%p298_p2), 261120  }
   0x8   : > { %377 = vperm.xlu1 (!%p298_p2), %1900, %v363_v3  }
   0x9   : > { %v2378_v50 = vadd.s32 (!%p298_p2), 128, %v2375_v49  ;;  %v502_v51 = vand.u32 (!%p298_p2), 15, %v2375_v49  ;;  %vm546_vm1 = vcmp.lt.s32.totalorder (!%p298_p2), %v2375_v49, 1  ;;  %vm579_vm4 = vcmp.lt.s32.totalorder (!%p298_p2), %v2375_v49, 127 }
   0xa   : > { %vm526_vm7 = vcmp.lt.s32.totalorder (!%p298_p2), %v2375_v49, 16  ;;  %vm708_vm8 = vcmp.lt.s32.totalorder (!%p298_p2), %v2375_v49, 112  ;;  %v1286_v49 = vld [vmem:[%s3340_s6 + $0x30] sm:$0xff] (!%p298_p2) }
   0xb   : > { %372 = vperm.xlu0 (!%p298_p2), %1899, %v362_v4   ;;  %v509_v52 = vand.u32 (!%p298_p2), 15, %v2378_v50  ;;  %vm2383_vm2 = vcmp.eq.s32.totalorder (!%p298_p2), %v502_v51, 0  ;;  %vm2470_vm5 = vcmp.eq.s32.totalorder (!%p298_p2), %v502_v51, 15  ;;  %vm529_vm9 = vcmp.ge.s32.totalorder (!%p298_p2), %v2378_v50, 240  ;;  %v1283_v50 = vld [vmem:[%s3340_s6 + $0x18] sm:$0xff] (!%p298_p2) }
   0xc   : > { %382 = vperm.xlu1 (!%p298_p2), %1900, %v364_v5  }
   0xd   : > { %s3353_s10 = smov (!%p338_p3, %s1668_s10), 1  ;;  %vm2387_vm3 = vcmp.eq.s32.totalorder %v509_v52, 0  ;;  %vm2476_vm6 = vcmp.eq.s32.totalorder %v509_v52, 15 }
   0xe   : > { %s1694_s15 = sshll.u32 %s3353_s10, 5  ;;  %s1695_s29 = sshll.u32 %s3353_s10, 4 }
   0xf   : > { %s342_s22 = scalar_lea.vmem %s3334_s0, %s1694_s15  ;;  %s2234_s15 = smov 112  }
  0x10   : > { %v358_v6 = vld [vmem:[%s342_s22 + $0x8] sm:$0xff]  ;;  %v360_v7 = vld [vmem:[%s342_s22 + $0x18] sm:$0xff]  ;;  %v357_v8 = vld [vmem:[%s342_s22] sm:$0xff]  ;;  %s347_s17 = scalar_lea.vmem %s3335_s1, %s1695_s29 }
  0x11   : > { %v1697_v9 = vpack.c.bf16 %v360_v7, %v358_v6  ;;  %v359_v10 = vld [vmem:[%s342_s22 + $0x10] sm:$0xff] }
  0x12   : > { %v1699_v11 = vpack.c.bf16 %v359_v10, %v357_v8 }
  0x13   : > { %1698 = vmatprep.subr.bf16.mxu0 %v1697_v9 }
  0x14   : > { %1700 = vmatpush1.bf16.msra.mxu0 %v1699_v11 }
  0x17   : > { %1679 = vmatmul.mubr.msk.f32.vlgmr.msra.gmra.mrb[0].mxu0 %vm385_vm0, %v353_v12 }
  0x18   : > { %468 = vmatprep.mubr.f32.mxu0 %v2229_v0 }
  0x1b   : > { %1680 = vmatmul.mubr.msk.f32.gmra.mrb[2].mxu0 %vm385_vm0, %v354_v13 }
  0x1c   : > { %474 = vmatprep.mubr.f32.mxu0 %v2229_v0 }
  0x1f   : > { %1681 = vmatmul.mubr.msk.f32.gmra.mrb[4].mxu0 %vm385_vm0, %v355_v14 }
  0x20   : > { %480 = vmatprep.mubr.f32.mxu0 %v2229_v0 }
  0x23   : > { %1682 = vmatmul.mubr.msk.f32.gmra.mrb[6].mxu0 %vm385_vm0, %v356_v15 }
  0x86   : > { %v368_v16 = vpop.permute.xlu0 %367 }
  0x87   : > { %v378_v25 = vpop.permute.xlu1 %377 }
  0x8a   : > { %v373_v19 = vpop.permute.xlu0 %372 }
  0x8b   : > { %v383_v36 = vpop.permute.xlu1 %382 }
  0xea   : > { %v464_v17 = vpop.f32.mrb[0].mxu0 }
  0xeb   : > { %v466_v18 = vpop.f32.mrb[1].mxu0  ;;  %v465_v20 = vadd.f32 %v464_v17, %v368_v16 }
  0xec   : > { %v467_v21 = vadd.f32 %v466_v18, %v368_v16 }
  0xed   : > { %v2327_v27 = vmax.f32 %v465_v20, 0.0 }
  0xee   : > { %v470_v22 = vpop.f32.mrb[2].mxu0  ;;  %v2331_v29 = vmax.f32 %v467_v21, 0.0 }
  0xef   : > { %v471_v23 = vadd.f32 %v470_v22, %v373_v19  ;;  %v472_v24 = vpop.f32.mrb[3].mxu0 }
  0xf0   : > { %v473_v26 = vadd.f32 %v472_v24, %v373_v19 }
  0xf1   : > { %v2329_v28 = vmax.f32 %v471_v23, 0.0 }
  0xf2   : > { %v2333_v30 = vmax.f32 %v473_v26, 0.0  ;;  %v476_v31 = vpop.f32.mrb[4].mxu0 }
  0xf3   : > { %v478_v32 = vpop.f32.mrb[5].mxu0  ;;  %v2337_v33 = vpack.i.bf16 %v2329_v28, %v2327_v27  ;;  %v477_v35 = vadd.f32 %v476_v31, %v378_v25 }
  0xf4   : > { %v2341_v34 = vpack.i.bf16 %v2333_v30, %v2331_v29  ;;  %v479_v37 = vadd.f32 %v478_v32, %v378_v25 }
  0xf5   : > { %1902 = vrot.lane.b32.xlu0 %v2337_v33, %s2231_s12  ;;  %v2347_v42 = vmax.f32 %v477_v35, 0.0 }
  0xf6   : > { %v482_v38 = vpop.f32.mrb[6].mxu0  ;;  %1907 = vrot.lane.b32.xlu1 %v2341_v34, %s2231_s12  ;;  %v2351_v44 = vmax.f32 %v479_v37, 0.0 }
  0xf7   : > { %v483_v39 = vadd.f32 %v482_v38, %v383_v36  ;;  %v484_v40 = vpop.f32.mrb[7].mxu0 }
  0xf8   : > { %v485_v41 = vadd.f32 %v484_v40, %v383_v36 }
  0xf9   : > { %v2349_v43 = vmax.f32 %v483_v39, 0.0 }
  0xfa   : > { %v2353_v45 = vmax.f32 %v485_v41, 0.0 }
  0xfb   : > { %v2357_v46 = vpack.i.bf16 %v2349_v43, %v2347_v42 }
  0xfc   : > { %v2361_v47 = vpack.i.bf16 %v2353_v45, %v2351_v44 }
  0xfd   : > { %1912 = vrot.lane.b32.xlu0 %v2357_v46, %s2231_s12 }
  0xfe   : > { %1917 = vrot.lane.b32.xlu1 %v2361_v47, %s2231_s12 }
 0x101   : > { %1922 = vrot.lane.b32.xlu0 %v2337_v33, %s2232_s13 }
 0x102   : > { %1927 = vrot.lane.b32.xlu1 %v2341_v34, %s2232_s13 }
 0x105   : > { %1932 = vrot.lane.b32.xlu0 %v2357_v46, %s2232_s13 }
 0x106   : > { %1937 = vrot.lane.b32.xlu1 %v2361_v47, %s2232_s13 }
 0x167   : > { %v1903_v53 = vpop.permute.xlu0 %1902 }
 0x168   : > { %v1905_v54 = vunpack.i.h.bf16 %v1903_v53  ;;  %v1904_v55 = vunpack.i.l.bf16 %v1903_v53  ;;  %v1908_v56 = vpop.permute.xlu1 %1907 }
 0x169   : > { %v1910_v57 = vunpack.i.h.bf16 %v1908_v56  ;;  %v1909_v58 = vunpack.i.l.bf16 %v1908_v56 }
 0x16b   : > { %v547_v61 = vsel %vm546_vm1, %v1904_v55, %v1909_v58  ;;  %v548_v62 = vsel %vm546_vm1, %v1905_v54, %v1910_v57  ;;  %v551_v63 = vsel %vm546_vm1, %v1909_v58, %v1904_v55  ;;  %v552_v1 = vsel %vm546_vm1, %v1910_v57, %v1905_v54  ;;  %v1292_v55 = vld [vmem:[%s3341_s7] sm:$0xff] }
 0x16c   : > { %v2402_v2 = vsel %vm2383_vm2, %v2327_v27, %v551_v63  ;;  %v2407_v3 = vsel %vm2383_vm2, %v2329_v28, %v552_v1  ;;  %v2412_v4 = vsel %vm2387_vm3, %v2331_v29, %v547_v61  ;;  %v2417_v5 = vsel %vm2387_vm3, %v2333_v30, %v548_v62 }
 0x16d   : > { %v2421_v6 = vpack.i.bf16 %v2407_v3, %v2402_v2  ;;  %v2425_v7 = vpack.i.bf16 %v2417_v5, %v2412_v4 }
 0x16f   : > { %v1913_v8 = vpop.permute.xlu0 %1912  ;;  %1942 = vrot.lane.b32.xlu0 %v2421_v6, %s2233_s14  ;;  %1947 = vrot.lane.b32.xlu1 %v2425_v7, %s2233_s14 }
 0x170   : > { %v1915_v9 = vunpack.i.h.bf16 %v1913_v8  ;;  %v1914_v10 = vunpack.i.l.bf16 %v1913_v8  ;;  %v1918_v11 = vpop.permute.xlu1 %1917 }
 0x171   : > { %v1920_v12 = vunpack.i.h.bf16 %v1918_v11  ;;  %v1919_v13 = vunpack.i.l.bf16 %v1918_v11 }
 0x173   : > { %v549_v14 = vsel %vm546_vm1, %v1914_v10, %v1919_v13  ;;  %v550_v15 = vsel %vm546_vm1, %v1915_v9, %v1920_v12  ;;  %v553_v16 = vsel %vm546_vm1, %v1919_v13, %v1914_v10  ;;  %v554_v17 = vsel %vm546_vm1, %v1920_v12, %v1915_v9  ;;  %v1923_v18 = vpop.permute.xlu0 %1922 }
 0x174   : > { %v1928_v19 = vpop.permute.xlu1 %1927  ;;  %v2442_v20 = vsel %vm2383_vm2, %v2347_v42, %v553_v16  ;;  %v2447_v21 = vsel %vm2383_vm2, %v2349_v43, %v554_v17  ;;  %v1925_v22 = vunpack.i.h.bf16 %v1923_v18  ;;  %v2454_v24 = vsel %vm2387_vm3, %v2351_v44, %v549_v14 }
 0x175   : > { %v1951_v23 = vpack.i.bf16 %v2447_v21, %v2442_v20  ;;  %v1924_v25 = vunpack.i.l.bf16 %v1923_v18  ;;  %v1930_v26 = vunpack.i.h.bf16 %v1928_v19  ;;  %v1929_v31 = vunpack.i.l.bf16 %v1928_v19 }
 0x176   : > { %v2459_v32 = vsel %vm2387_vm3, %v2353_v45, %v550_v15 }
 0x177   : > { %1952 = vrot.lane.b32.xlu0 %v1951_v23, %s2233_s14  ;;  %v1933_v35 = vpop.permute.xlu0 %1932  ;;  %v1961_v36 = vpack.i.bf16 %v2459_v32, %v2454_v24  ;;  %v580_v38 = vsel %vm579_vm4, %v1924_v25, %v1929_v31  ;;  %v581_v39 = vsel %vm579_vm4, %v1925_v22, %v1930_v26  ;;  %v584_v56 = vsel %vm579_vm4, %v1929_v31, %v1924_v25 }
 0x178   : > { %v1938_v37 = vpop.permute.xlu1 %1937  ;;  %v1935_v41 = vunpack.i.h.bf16 %v1933_v35  ;;  %v1934_v48 = vunpack.i.l.bf16 %v1933_v35  ;;  %v585_v51 = vsel %vm579_vm4, %v1930_v26, %v1925_v22  ;;  %v2489_v57 = vsel %vm2470_vm5, %v2327_v27, %v580_v38 }
 0x179   : > { %1962 = vrot.lane.b32.xlu1 %v1961_v36, %s2233_s14  ;;  %v1940_v53 = vunpack.i.h.bf16 %v1938_v37  ;;  %v1939_v54 = vunpack.i.l.bf16 %v1938_v37  ;;  %v2494_v52 = vsel %vm2470_vm5, %v2329_v28, %v581_v39  ;;  %v2507_v63 = vsel %vm2476_vm6, %v2331_v29, %v584_v56 }
 0x17a   : > { %v1981_v62 = vpack.i.bf16 %v2494_v52, %v2489_v57  ;;  %v2512_v1 = vsel %vm2476_vm6, %v2333_v30, %v585_v51 }
 0x17b   : > { %1957 = vrot.lane.b32.xlu0 %v2337_v33, %s2233_s14  ;;  %v582_v58 = vsel %vm579_vm4, %v1934_v48, %v1939_v54  ;;  %v583_v61 = vsel %vm579_vm4, %v1935_v41, %v1940_v53  ;;  %v586_v8 = vsel %vm579_vm4, %v1939_v54, %v1934_v48  ;;  %v587_v9 = vsel %vm579_vm4, %v1940_v53, %v1935_v41 }
 0x17c   : > { %v2523_v10 = vsel %vm2470_vm5, %v2347_v42, %v582_v58  ;;  %v2528_v11 = vsel %vm2470_vm5, %v2349_v43, %v583_v61  ;;  %v1986_v12 = vpack.i.bf16 %v2512_v1, %v2507_v63  ;;  %v2538_v14 = vsel %vm2476_vm6, %v2351_v44, %v586_v8 }
 0x17d   : > { %1967 = vrot.lane.b32.xlu1 %v2341_v34, %s2233_s14  ;;  %v1991_v13 = vpack.i.bf16 %v2528_v11, %v2523_v10  ;;  %v2543_v15 = vsel %vm2476_vm6, %v2353_v45, %v587_v9 }
 0x17e   : > { %v1996_v16 = vpack.i.bf16 %v2543_v15, %v2538_v14 }
 0x17f   : > { %1972 = vrot.lane.b32.xlu0 %v2357_v46, %s2233_s14 }
 0x181   : > { %1977 = vrot.lane.b32.xlu1 %v2361_v47, %s2233_s14 }
 0x183   : > { %1982 = vrot.lane.b32.xlu0 %v1981_v62, %s2233_s14 }
 0x185   : > { %1987 = vrot.lane.b32.xlu1 %v1986_v12, %s2233_s14 }
 0x187   : > { %1992 = vrot.lane.b32.xlu0 %v1991_v13, %s2233_s14 }
 0x189   : > { %1997 = vrot.lane.b32.xlu1 %v1996_v16, %s2233_s14 }
 0x18b   : > { %2002 = vrot.lane.b32.xlu0 %v2421_v6, %s2234_s15  ;;  %v801_v6 = vld [vmem:[%s3339_s5] sm:$0xff] }
 0x18d   : > { %2007 = vrot.lane.b32.xlu1 %v2425_v7, %s2234_s15 }
 0x18f   : > { %2012 = vrot.lane.b32.xlu0 %v1951_v23, %s2234_s15 }
 0x191   : > { %2022 = vrot.lane.b32.xlu1 %v1961_v36, %s2234_s15 }
 0x193   : > { %2017 = vrot.lane.b32.xlu0 %v2337_v33, %s2234_s15  ;;  %v802_v33 = vld [vmem:[%s3339_s5 + $0x8] sm:$0xff] }
 0x195   : > { %2027 = vrot.lane.b32.xlu1 %v2341_v34, %s2234_s15  ;;  %v803_v34 = vld [vmem:[%s3339_s5 + $0x10] sm:$0xff] }
 0x197   : > { %2032 = vrot.lane.b32.xlu0 %v2357_v46, %s2234_s15  ;;  %v804_v46 = vld [vmem:[%s3339_s5 + $0x18] sm:$0xff] }
 0x199   : > { %2037 = vrot.lane.b32.xlu1 %v2361_v47, %s2234_s15  ;;  %v790_v47 = vld [vmem:[%s3338_s4 + $0x8] sm:$0xff] }
 0x19a   : > { %902 = vmatprep.mubr.f32.mxu1 %v790_v47 }
 0x19b   : > { %2042 = vrot.lane.b32.xlu0 %v1981_v62, %s2234_s15 }
 0x19d   : > { %2047 = vrot.lane.b32.xlu1 %v1986_v12, %s2234_s15 }
 0x19f   : > { %2052 = vrot.lane.b32.xlu0 %v1991_v13, %s2234_s15 }
 0x1a1   : > { %2057 = vrot.lane.b32.xlu1 %v1996_v16, %s2234_s15 }
 0x1a3   : > { %807 = vperm.xlu0 %1899, %v801_v6  }
 0x1a5   : > { %812 = vperm.xlu1 %1900, %v802_v33  }
 0x1a7   : > { %817 = vperm.xlu0 %1899, %v803_v34  }
 0x1a9   : > { %822 = vperm.xlu1 %1900, %v804_v46  }
 0x1e1   : > { %v1943_v7 = vpop.permute.xlu0 %1942  ;;  %v1948_v17 = vpop.permute.xlu1 %1947 }
 0x1e2   : > { %v1945_v18 = vunpack.i.h.bf16 %v1943_v7  ;;  %v1944_v19 = vunpack.i.l.bf16 %v1943_v7  ;;  %v1950_v22 = vunpack.i.h.bf16 %v1948_v17  ;;  %v1949_v23 = vunpack.i.l.bf16 %v1948_v17 }
 0x1e4   : > { %v612_v25 = vsel %vm526_vm7, %v1944_v19, %v1949_v23  ;;  %v613_v26 = vsel %vm526_vm7, %v1945_v18, %v1950_v22  ;;  %v616_v31 = vsel %vm526_vm7, %v1949_v23, %v1944_v19  ;;  %v617_v35 = vsel %vm526_vm7, %v1950_v22, %v1945_v18 }
 0x1e5   : > { %v1701_v36 = vpack.c.bf16 %v613_v26, %v612_v25  ;;  %v620_v37 = vsel %vm526_vm7, %v2402_v2, %v616_v31  ;;  %v622_v38 = vsel %vm526_vm7, %v2407_v3, %v617_v35 }
 0x1e6   : > { %v1703_v39 = vpack.c.bf16 %v622_v38, %v620_v37 }
 0x1e7   : > { %1702 = vmatprep.subr.bf16.mxu1 %v1701_v36 }
 0x1e8   : > { %1704 = vmatpush1.bf16.msra.mxu1 %v1703_v39 }
 0x1e9   : > { %v1953_v41 = vpop.permute.xlu0 %1952 }
 0x1ea   : > { %v1955_v48 = vunpack.i.h.bf16 %v1953_v41  ;;  %v1954_v53 = vunpack.i.l.bf16 %v1953_v41 }
 0x1eb   : > { %v1963_v54 = vpop.permute.xlu1 %1962 }
 0x1ec   : > { %v1965_v56 = vunpack.i.h.bf16 %v1963_v54  ;;  %v1964_v51 = vunpack.i.l.bf16 %v1963_v54 }
 0x1ed   : > { %v1958_v58 = vpop.permute.xlu0 %1957 }
 0x1ee   : > { %v1960_v61 = vunpack.i.h.bf16 %v1958_v58  ;;  %v1959_v62 = vunpack.i.l.bf16 %v1958_v58  ;;  %v619_v8 = vsel %vm526_vm7, %v1965_v56, %v1955_v48  ;;  %v618_v9 = vsel %vm526_vm7, %v1964_v51, %v1954_v53 }
 0x1ef   : > { %v614_v12 = vsel %vm526_vm7, %v1954_v53, %v1964_v51  ;;  %v615_v13 = vsel %vm526_vm7, %v1955_v48, %v1965_v56  ;;  %v1968_v16 = vpop.permute.xlu1 %1967  ;;  %v624_v33 = vsel %vm526_vm7, %v2442_v20, %v618_v9  ;;  %v626_v34 = vsel %vm526_vm7, %v2447_v21, %v619_v8 }
 0x1f0   : > { %v1705_v6 = vpack.c.bf16 %v615_v13, %v614_v12  ;;  %v1970_v46 = vunpack.i.h.bf16 %v1968_v16  ;;  %v1969_v47 = vunpack.i.l.bf16 %v1968_v16  ;;  %v1707_v7 = vpack.c.bf16 %v626_v34, %v624_v33 }
 0x1f1   : > { %v1973_v17 = vpop.permute.xlu0 %1972 }
 0x1f2   : > { %1706 = vmatprep.subr.bf16.mxu1 %v1705_v6  ;;  %v1975_v18 = vunpack.i.h.bf16 %v1973_v17  ;;  %v1974_v19 = vunpack.i.l.bf16 %v1973_v17  ;;  %v649_v22 = vsel %vm526_vm7, %v1970_v46, %v1960_v61  ;;  %v648_v23 = vsel %vm526_vm7, %v1969_v47, %v1959_v62 }
 0x1f3   : > { %1708 = vmatpush1.bf16.msra.mxu1 %v1707_v7  ;;  %v644_v25 = vsel %vm526_vm7, %v1959_v62, %v1969_v47  ;;  %v645_v26 = vsel %vm526_vm7, %v1960_v61, %v1970_v46  ;;  %v1978_v31 = vpop.permute.xlu1 %1977  ;;  %v652_v36 = vsel %vm526_vm7, %v2327_v27, %v648_v23  ;;  %v654_v37 = vsel %vm526_vm7, %v2329_v28, %v649_v22 }
 0x1f4   : > { %v1709_v35 = vpack.c.bf16 %v645_v26, %v644_v25  ;;  %v1980_v38 = vunpack.i.h.bf16 %v1978_v31  ;;  %v1979_v39 = vunpack.i.l.bf16 %v1978_v31  ;;  %v1711_v41 = vpack.c.bf16 %v654_v37, %v652_v36 }
 0x1f5   : > { %v1983_v48 = vpop.permute.xlu0 %1982 }
 0x1f6   : > { %1710 = vmatprep.subr.bf16.mxu1 %v1709_v35  ;;  %v1985_v53 = vunpack.i.h.bf16 %v1983_v48  ;;  %v1984_v54 = vunpack.i.l.bf16 %v1983_v48  ;;  %v651_v56 = vsel %vm526_vm7, %v1980_v38, %v1975_v18  ;;  %v650_v51 = vsel %vm526_vm7, %v1979_v39, %v1974_v19 }
 0x1f7   : > { %1712 = vmatpush1.bf16.msra.mxu1 %v1711_v41  ;;  %v646_v58 = vsel %vm526_vm7, %v1974_v19, %v1979_v39  ;;  %v647_v61 = vsel %vm526_vm7, %v1975_v18, %v1980_v38  ;;  %v1988_v62 = vpop.permute.xlu1 %1987  ;;  %v656_v9 = vsel %vm526_vm7, %v2347_v42, %v650_v51  ;;  %v658_v12 = vsel %vm526_vm7, %v2349_v43, %v651_v56 }
 0x1f8   : > { %v1713_v8 = vpack.c.bf16 %v647_v61, %v646_v58  ;;  %v1990_v13 = vunpack.i.h.bf16 %v1988_v62  ;;  %v1989_v16 = vunpack.i.l.bf16 %v1988_v62  ;;  %v1715_v6 = vpack.c.bf16 %v658_v12, %v656_v9 }
 0x1f9   : > { %v1993_v33 = vpop.permute.xlu0 %1992  ;;  %v1725_v51 = vpack.c.bf16 %v2417_v5, %v2412_v4  ;;  %v1727_v61 = vpack.c.bf16 %v2407_v3, %v2402_v2  ;;  %v1729_v62 = vpack.c.bf16 %v2459_v32, %v2454_v24  ;;  %v1731_v12 = vpack.c.bf16 %v2447_v21, %v2442_v20 }
 0x1fa   : > { %1714 = vmatprep.subr.bf16.mxu1 %v1713_v8  ;;  %v1995_v34 = vunpack.i.h.bf16 %v1993_v33  ;;  %v1994_v46 = vunpack.i.l.bf16 %v1993_v33  ;;  %v681_v47 = vsel %vm526_vm7, %v1990_v13, %v1985_v53  ;;  %v680_v7 = vsel %vm526_vm7, %v1989_v16, %v1984_v54 }
 0x1fb   : > { %1716 = vmatpush1.bf16.msra.mxu1 %v1715_v6  ;;  %v676_v17 = vsel %vm526_vm7, %v1984_v54, %v1989_v16  ;;  %v677_v18 = vsel %vm526_vm7, %v1985_v53, %v1990_v13  ;;  %v1998_v19 = vpop.permute.xlu1 %1997  ;;  %v684_v23 = vsel %vm526_vm7, %v2489_v57, %v680_v7  ;;  %v686_v25 = vsel %vm526_vm7, %v2494_v52, %v681_v47 }
 0x1fc   : > { %v1717_v22 = vpack.c.bf16 %v677_v18, %v676_v17  ;;  %v2000_v26 = vunpack.i.h.bf16 %v1998_v19  ;;  %v1999_v31 = vunpack.i.l.bf16 %v1998_v19  ;;  %v1719_v35 = vpack.c.bf16 %v686_v25, %v684_v23 }
 0x1fd   : > { %v2003_v56 = vpop.permute.xlu0 %2002  ;;  %v1733_v13 = vpack.c.bf16 %v2333_v30, %v2331_v29  ;;  %v1735_v16 = vpack.c.bf16 %v2329_v28, %v2327_v27  ;;  %v1737_v3 = vpack.c.bf16 %v2353_v45, %v2351_v44  ;;  %v1739_v21 = vpack.c.bf16 %v2349_v43, %v2347_v42 }
 0x1fe   : > { %1718 = vmatprep.subr.bf16.mxu1 %v1717_v22  ;;  %v683_v36 = vsel %vm526_vm7, %v2000_v26, %v1995_v34  ;;  %v682_v37 = vsel %vm526_vm7, %v1999_v31, %v1994_v46  ;;  %v678_v38 = vsel %vm526_vm7, %v1994_v46, %v1999_v31  ;;  %v679_v39 = vsel %vm526_vm7, %v1995_v34, %v2000_v26 }
 0x1ff   : > { %1720 = vmatpush1.bf16.msra.mxu1 %v1719_v35  ;;  %v1721_v41 = vpack.c.bf16 %v679_v39, %v678_v38  ;;  %v688_v48 = vsel %vm526_vm7, %v2523_v10, %v682_v37  ;;  %v690_v53 = vsel %vm526_vm7, %v2528_v11, %v683_v36  ;;  %v2008_v58 = vpop.permute.xlu1 %2007  ;;  %v2005_v33 = vunpack.i.h.bf16 %v2003_v56 }
 0x200   : > { %v1723_v54 = vpack.c.bf16 %v690_v53, %v688_v48  ;;  %v2004_v34 = vunpack.i.l.bf16 %v2003_v56  ;;  %v2010_v46 = vunpack.i.h.bf16 %v2008_v58  ;;  %v2009_v20 = vunpack.i.l.bf16 %v2008_v58 }
 0x201   : > { %1722 = vmatprep.subr.bf16.mxu1 %v1721_v41  ;;  %v2674_v8 = vpop.permute.xlu0 %2012  ;;  %v1741_v47 = vpack.c.bf16 %v2512_v1, %v2507_v63  ;;  %v1743_v31 = vpack.c.bf16 %v2494_v52, %v2489_v57  ;;  %v1745_v35 = vpack.c.bf16 %v2543_v15, %v2538_v14  ;;  %v1747_v53 = vpack.c.bf16 %v2528_v11, %v2523_v10 }
 0x202   : > { %v2015_v7 = vunpack.i.h.bf16 %v2674_v8  ;;  %v2014_v17 = vunpack.i.l.bf16 %v2674_v8  ;;  %v714_v18 = vsel %vm708_vm8, %v2010_v46, %v2005_v33  ;;  %v713_v19 = vsel %vm708_vm8, %v2009_v20, %v2004_v34 }
 0x203   : > { %1724 = vmatpush1.bf16.msra.mxu1 %v1723_v54  ;;  %v2023_v9 = vpop.permute.xlu1 %2022  ;;  %v718_v38 = vsel %vm529_vm9, %v2412_v4, %v713_v19  ;;  %v720_v39 = vsel %vm529_vm9, %v2417_v5, %v714_v18  ;;  %v709_v56 = vsel %vm708_vm8, %v2004_v34, %v2009_v20  ;;  %v710_v5 = vsel %vm708_vm8, %v2005_v33, %v2010_v46 }
 0x204   : > { %1726 = vmatprep.subr.bf16.mxu1 %v1725_v51  ;;  %v2025_v22 = vunpack.i.h.bf16 %v2023_v9  ;;  %v2024_v23 = vunpack.i.l.bf16 %v2023_v9  ;;  %v1749_v4 = vpack.c.bf16 %v720_v39, %v718_v38 }
 0x205   : > { %v2682_v2 = vpop.permute.xlu0 %2017 }
 0x206   : > { %v2020_v36 = vunpack.i.h.bf16 %v2682_v2  ;;  %v2019_v37 = vunpack.i.l.bf16 %v2682_v2  ;;  %v716_v41 = vsel %vm708_vm8, %v2025_v22, %v2015_v7  ;;  %v715_v57 = vsel %vm708_vm8, %v2024_v23, %v2014_v17 }
 0x207   : > { %1728 = vmatpush1.bf16.msra.mxu1 %v1727_v61  ;;  %v2686_v6 = vpop.permute.xlu1 %2027  ;;  %v724_v10 = vsel %vm529_vm9, %v2459_v32, %v716_v41  ;;  %v712_v2 = vsel %vm708_vm8, %v2015_v7, %v2025_v22 }
 0x208   : > { %1730 = vmatprep.subr.bf16.mxu1 %v1729_v62  ;;  %v2030_v52 = vunpack.i.h.bf16 %v2686_v6  ;;  %v2029_v48 = vunpack.i.l.bf16 %v2686_v6  ;;  %v722_v62 = vsel %vm529_vm9, %v2454_v24, %v715_v57  ;;  %v711_v24 = vsel %vm708_vm8, %v2014_v17, %v2024_v23 }
 0x209   : > { %v2700_v25 = vpop.permute.xlu0 %2032  ;;  %v1755_v17 = vpack.c.bf16 %v712_v2, %v711_v24  ;;  %v798_v24 = vld [vmem:[%s3338_s4 + $0x48] sm:$0xff]  ;;  %v791_v2 = vld [vmem:[%s3338_s4 + $0x10] sm:$0xff] }
 0x20a   : > { %v2035_v51 = vunpack.i.h.bf16 %v2700_v25  ;;  %v2034_v58 = vunpack.i.l.bf16 %v2700_v25  ;;  %v746_v11 = vsel %vm708_vm8, %v2030_v52, %v2020_v36  ;;  %v745_v8 = vsel %vm708_vm8, %v2029_v48, %v2019_v37 }
 0x20b   : > { %1732 = vmatpush1.bf16.msra.mxu1 %v1731_v12  ;;  %v2702_v26 = vpop.permute.xlu1 %2037  ;;  %v750_v6 = vsel %vm529_vm9, %v2331_v29, %v745_v8  ;;  %v752_v33 = vsel %vm529_vm9, %v2333_v30, %v746_v11  ;;  %v741_v19 = vsel %vm708_vm8, %v2019_v37, %v2029_v48  ;;  %v742_v22 = vsel %vm708_vm8, %v2020_v36, %v2030_v52 }
 0x20c   : > { %1734 = vmatprep.subr.bf16.mxu1 %v1733_v13  ;;  %v2040_v9 = vunpack.i.h.bf16 %v2702_v26  ;;  %v2039_v12 = vunpack.i.l.bf16 %v2702_v26  ;;  %v1751_v13 = vpack.c.bf16 %v710_v5, %v709_v56  ;;  %v1757_v18 = vpack.c.bf16 %v752_v33, %v750_v6  ;;  %v800_v6 = vld [vmem:[%s3338_s4 + $0x58] sm:$0xff] }
 0x20d   : > { %v2043_v54 = vpop.permute.xlu0 %2042  ;;  %v1759_v36 = vpack.c.bf16 %v742_v22, %v741_v19 }
 0x20e   : > { %v2045_v32 = vunpack.i.h.bf16 %v2043_v54  ;;  %v748_v34 = vsel %vm708_vm8, %v2040_v9, %v2035_v51  ;;  %v747_v46 = vsel %vm708_vm8, %v2039_v12, %v2034_v58  ;;  %v743_v57 = vsel %vm708_vm8, %v2034_v58, %v2039_v12 }
 0x20f   : > { %1736 = vmatpush1.bf16.msra.mxu1 %v1735_v16  ;;  %v2048_v61 = vpop.permute.xlu1 %2047  ;;  %v1753_v16 = vpack.c.bf16 %v724_v10, %v722_v62  ;;  %v754_v26 = vsel %vm529_vm9, %v2351_v44, %v747_v46  ;;  %v744_v52 = vsel %vm708_vm8, %v2035_v51, %v2040_v9  ;;  %v793_v62 = vld [vmem:[%s3338_s4 + $0x20] sm:$0xff] }
 0x210   : > { %1738 = vmatprep.subr.bf16.mxu1 %v1737_v3  ;;  %v2044_v3 = vunpack.i.l.bf16 %v2043_v54  ;;  %v2050_v20 = vunpack.i.h.bf16 %v2048_v61  ;;  %v1763_v56 = vpack.c.bf16 %v744_v52, %v743_v57 }
 0x212   : > { %v774_v5 = vsel %vm708_vm8, %v2045_v32, %v2050_v20 }
 0x213   : > { %1740 = vmatpush1.bf16.msra.mxu1 %v1739_v21  ;;  %v2049_v21 = vunpack.i.l.bf16 %v2048_v61  ;;  %v2058_v7 = vpop.permute.xlu1 %2057 }
 0x214   : > { %1742 = vmatprep.subr.bf16.mxu1 %v1741_v47  ;;  %v2053_v47 = vpop.permute.xlu0 %2052  ;;  %v2060_v38 = vunpack.i.h.bf16 %v2058_v7  ;;  %v2059_v39 = vunpack.i.l.bf16 %v2058_v7 }
 0x215   : > { %v2055_v23 = vunpack.i.h.bf16 %v2053_v47  ;;  %v2054_v25 = vunpack.i.l.bf16 %v2053_v47  ;;  %v777_v37 = vsel %vm708_vm8, %v2049_v21, %v2044_v3  ;;  %v773_v51 = vsel %vm708_vm8, %v2044_v3, %v2049_v21  ;;  %v797_v3 = vld [vmem:[%s3338_s4 + $0x40] sm:$0xff] }
 0x216   : > { %v782_v48 = vsel %vm529_vm9, %v2507_v63, %v777_v37  ;;  %v789_v63 = vld [vmem:[%s3338_s4] sm:$0xff]  ;;  %v1767_v10 = vpack.c.bf16 %v774_v5, %v773_v51 }
 0x217   : > { %1744 = vmatpush1.bf16.msra.mxu1 %v1743_v31  ;;  %v756_v31 = vsel %vm529_vm9, %v2353_v45, %v748_v34  ;;  %v780_v54 = vsel %vm708_vm8, %v2060_v38, %v2055_v23  ;;  %v776_v11 = vsel %vm708_vm8, %v2055_v23, %v2060_v38  ;;  %v775_v8 = vsel %vm708_vm8, %v2054_v25, %v2059_v39 }
 0x218   : > { %1746 = vmatprep.subr.bf16.mxu1 %v1745_v35  ;;  %v778_v35 = vsel %vm708_vm8, %v2050_v20, %v2045_v32  ;;  %v1761_v41 = vpack.c.bf16 %v756_v31, %v754_v26  ;;  %v788_v61 = vsel %vm529_vm9, %v2543_v15, %v780_v54  ;;  %v796_v15 = vld [vmem:[%s3338_s4 + $0x38] sm:$0xff]  ;;  %v1771_v12 = vpack.c.bf16 %v776_v11, %v775_v8  ;;  %v794_v32 = vld [vmem:[%s3338_s4 + $0x28] sm:$0xff] }
 0x21b   : > { %1748 = vmatpush1.bf16.msra.mxu1 %v1747_v53  ;;  %v784_v53 = vsel %vm529_vm9, %v2512_v1, %v778_v35 }
 0x21c   : > { %1750 = vmatprep.subr.bf16.mxu1 %v1749_v4  ;;  %v779_v4 = vsel %vm708_vm8, %v2059_v39, %v2054_v25  ;;  %v1765_v58 = vpack.c.bf16 %v784_v53, %v782_v48 }
 0x21d   : > { %v786_v1 = vsel %vm529_vm9, %v2538_v14, %v779_v4  ;;  %v792_v14 = vld [vmem:[%s3338_s4 + $0x18] sm:$0xff] }
 0x21e   : > { %v1769_v9 = vpack.c.bf16 %v788_v61, %v786_v1 }
 0x21f   : > { %1752 = vmatpush1.bf16.msra.mxu1 %v1751_v13  ;;  %v795_v13 = vld [vmem:[%s3338_s4 + $0x30] sm:$0xff] }
 0x220   : > { %1754 = vmatprep.subr.bf16.mxu1 %v1753_v16  ;;  %v799_v16 = vld [vmem:[%s3338_s4 + $0x50] sm:$0xff] }
 0x222   : > { %v808_v46 = vpop.permute.xlu0 %807 }
 0x223   : > { %1756 = vmatpush1.bf16.msra.mxu1 %v1755_v17 }
 0x224   : > { %1758 = vmatprep.subr.bf16.mxu1 %v1757_v18  ;;  %v813_v21 = vpop.permute.xlu1 %812 }
 0x226   : > { %v818_v38 = vpop.permute.xlu0 %817 }
 0x227   : > { %1760 = vmatpush1.bf16.msra.mxu1 %v1759_v36 }
 0x228   : > { %1762 = vmatprep.subr.bf16.mxu1 %v1761_v41  ;;  %v823_v41 = vpop.permute.xlu1 %822 }
 0x22b   : > { %1764 = vmatpush1.bf16.msra.mxu1 %v1763_v56 }
 0x22c   : > { %1766 = vmatprep.subr.bf16.mxu1 %v1765_v58 }
 0x22e   : > { %903 = vmatmul.mubr.f32.vlgmr.msra.gmra.mrb[0].mxu1 %v789_v63 }
 0x22f   : > { %1768 = vmatpush1.bf16.msra.mxu1 %v1767_v10  ;;  %908 = vmatprep.mubr.f32.mxu1 %v793_v62 }
 0x230   : > { %1770 = vmatprep.subr.bf16.mxu1 %v1769_v9 }
 0x232   : > { %909 = vmatmul.mubr.f32.gmra.mrb[2].mxu1 %v792_v14 }
 0x233   : > { %1772 = vmatpush1.bf16.msra.mxu1 %v1771_v12  ;;  %914 = vmatprep.mubr.f32.mxu1 %v796_v15 }
 0x236   : > { %915 = vmatmul.mubr.f32.gmra.mrb[4].mxu1 %v795_v13 }
 0x237   : > { %920 = vmatprep.mubr.f32.mxu1 %v799_v16 }
 0x23a   : > { %921 = vmatmul.mubr.f32.gmra.mrb[6].mxu1 %v798_v24 }
 0x23b   : > { %991 = vmatprep.mubr.f32.mxu1 %v2229_v0 }
 0x23e   : > { %1683 = vmatmul.mubr.msk.f32.vlgmr.msra.gmra.mrb[0].mxu1 %vm825_vm10, %v791_v2 }
 0x23f   : > { %997 = vmatprep.mubr.f32.mxu1 %v2229_v0 }
 0x242   : > { %1684 = vmatmul.mubr.msk.f32.gmra.mrb[2].mxu1 %vm825_vm10, %v794_v32 }
 0x243   : > { %1003 = vmatprep.mubr.f32.mxu1 %v2229_v0 }
 0x246   : > { %1685 = vmatmul.mubr.msk.f32.gmra.mrb[4].mxu1 %vm825_vm10, %v797_v3 }
 0x247   : > { %1009 = vmatprep.mubr.f32.mxu1 %v2229_v0 }
 0x24a   : > { %1686 = vmatmul.mubr.msk.f32.gmra.mrb[6].mxu1 %vm825_vm10, %v800_v6 }
 0x24b   : > { %1592 = vmatprep.mubr.f32.mxu1 %v2229_v0 }
 0x311   : > { %v993_v33 = vpop.f32.mrb[0].mxu1 }
 0x312   : > { %v995_v34 = vpop.f32.mrb[1].mxu1  ;;  %v1853_v20 = vadd.f32 %v993_v33, %v808_v46 }
 0x313   : > { %v1854_v47 = vadd.f32 %v995_v34, %v808_v46 }
 0x314   : > { %v2840_v22 = vmax.f32 %v1853_v20, 0.0 }
 0x315   : > { %v999_v7 = vpop.f32.mrb[2].mxu1  ;;  %v2844_v25 = vmax.f32 %v1854_v47, 0.0 }
 0x316   : > { %v1855_v17 = vadd.f32 %v999_v7, %v813_v21  ;;  %v1001_v18 = vpop.f32.mrb[3].mxu1 }
 0x317   : > { %v1856_v19 = vadd.f32 %v1001_v18, %v813_v21 }
 0x318   : > { %v2842_v23 = vmax.f32 %v1855_v17, 0.0 }
 0x319   : > { %v2846_v26 = vmax.f32 %v1856_v19, 0.0  ;;  %v1005_v31 = vpop.f32.mrb[4].mxu1 }
 0x31a   : > { %v1007_v35 = vpop.f32.mrb[5].mxu1  ;;  %v2850_v37 = vpack.i.bf16 %v2842_v23, %v2840_v22  ;;  %v1857_v36 = vadd.f32 %v1005_v31, %v818_v38 }
 0x31b   : > { %v2854_v39 = vpack.i.bf16 %v2846_v26, %v2844_v25  ;;  %v1858_v57 = vadd.f32 %v1007_v35, %v818_v38 }
 0x31c   : > { %2062 = vrot.lane.b32.xlu0 %v2850_v37, %s2231_s12  ;;  %v2860_v4 = vmax.f32 %v1857_v36, 0.0 }
 0x31d   : > { %v1011_v52 = vpop.f32.mrb[6].mxu1  ;;  %2067 = vrot.lane.b32.xlu1 %v2854_v39, %s2231_s12  ;;  %v2864_v5 = vmax.f32 %v1858_v57, 0.0 }
 0x31e   : > { %v1859_v48 = vadd.f32 %v1011_v52, %v823_v41  ;;  %v1013_v53 = vpop.f32.mrb[7].mxu1 }
 0x31f   : > { %v1860_v54 = vadd.f32 %v1013_v53, %v823_v41 }
 0x320   : > { %v2862_v56 = vmax.f32 %v1859_v48, 0.0 }
 0x321   : > { %v2866_v51 = vmax.f32 %v1860_v54, 0.0 }
 0x322   : > { %v2870_v58 = vpack.i.bf16 %v2862_v56, %v2860_v4 }
 0x323   : > { %v2874_v63 = vpack.i.bf16 %v2866_v51, %v2864_v5 }
 0x324   : > { %2072 = vrot.lane.b32.xlu0 %v2870_v58, %s2231_s12 }
 0x325   : > { %2077 = vrot.lane.b32.xlu1 %v2874_v63, %s2231_s12 }
 0x328   : > { %2082 = vrot.lane.b32.xlu0 %v2850_v37, %s2232_s13 }
 0x329   : > { %2087 = vrot.lane.b32.xlu1 %v2854_v39, %s2232_s13 }
 0x32c   : > { %2092 = vrot.lane.b32.xlu0 %v2870_v58, %s2232_s13 }
 0x32d   : > { %2097 = vrot.lane.b32.xlu1 %v2874_v63, %s2232_s13 }
 0x38e   : > { %v2063_v1 = vpop.permute.xlu0 %2062 }
 0x38f   : > { %v2065_v61 = vunpack.i.h.bf16 %v2063_v1  ;;  %v2064_v62 = vunpack.i.l.bf16 %v2063_v1  ;;  %v2068_v10 = vpop.permute.xlu1 %2067 }
 0x390   : > { %v2070_v11 = vunpack.i.h.bf16 %v2068_v10  ;;  %v2069_v8 = vunpack.i.l.bf16 %v2068_v10 }
 0x392   : > { %v1040_v9 = vsel %vm546_vm1, %v2064_v62, %v2069_v8  ;;  %v1041_v14 = vsel %vm546_vm1, %v2065_v61, %v2070_v11  ;;  %v1044_v15 = vsel %vm546_vm1, %v2069_v8, %v2064_v62  ;;  %v1045_v12 = vsel %vm546_vm1, %v2070_v11, %v2065_v61 }
 0x393   : > { %v2899_v13 = vsel %vm2383_vm2, %v2840_v22, %v1044_v15  ;;  %v2904_v16 = vsel %vm2383_vm2, %v2842_v23, %v1045_v12  ;;  %v2909_v24 = vsel %vm2387_vm3, %v2844_v25, %v1040_v9  ;;  %v2914_v2 = vsel %vm2387_vm3, %v2846_v26, %v1041_v14 }
 0x394   : > { %v2101_v32 = vpack.i.bf16 %v2904_v16, %v2899_v13  ;;  %v2106_v3 = vpack.i.bf16 %v2914_v2, %v2909_v24 }
 0x396   : > { %v2073_v6 = vpop.permute.xlu0 %2072  ;;  %2102 = vrot.lane.b32.xlu0 %v2101_v32, %s2233_s14  ;;  %2107 = vrot.lane.b32.xlu1 %v2106_v3, %s2233_s14 }
 0x397   : > { %v2075_v33 = vunpack.i.h.bf16 %v2073_v6  ;;  %v2074_v34 = vunpack.i.l.bf16 %v2073_v6  ;;  %v2078_v46 = vpop.permute.xlu1 %2077 }
 0x398   : > { %v2080_v20 = vunpack.i.h.bf16 %v2078_v46  ;;  %v2079_v21 = vunpack.i.l.bf16 %v2078_v46 }
 0x39a   : > { %v1042_v47 = vsel %vm546_vm1, %v2074_v34, %v2079_v21  ;;  %v1043_v7 = vsel %vm546_vm1, %v2075_v33, %v2080_v20  ;;  %v1046_v17 = vsel %vm546_vm1, %v2079_v21, %v2074_v34  ;;  %v1047_v18 = vsel %vm546_vm1, %v2080_v20, %v2075_v33  ;;  %v2083_v19 = vpop.permute.xlu0 %2082 }
 0x39b   : > { %v2088_v31 = vpop.permute.xlu1 %2087  ;;  %v2933_v35 = vsel %vm2383_vm2, %v2860_v4, %v1046_v17  ;;  %v2938_v38 = vsel %vm2383_vm2, %v2862_v56, %v1047_v18  ;;  %v2085_v36 = vunpack.i.h.bf16 %v2083_v19  ;;  %v2945_v57 = vsel %vm2387_vm3, %v2864_v5, %v1042_v47 }
 0x39c   : > { %v2111_v41 = vpack.i.bf16 %v2938_v38, %v2933_v35  ;;  %v2084_v52 = vunpack.i.l.bf16 %v2083_v19  ;;  %v2090_v48 = vunpack.i.h.bf16 %v2088_v31  ;;  %v2089_v53 = vunpack.i.l.bf16 %v2088_v31 }
 0x39d   : > { %v2950_v54 = vsel %vm2387_vm3, %v2866_v51, %v1043_v7 }
 0x39e   : > { %2112 = vrot.lane.b32.xlu0 %v2111_v41, %s2233_s14  ;;  %v2093_v59 = vpop.permute.xlu0 %2092  ;;  %v2121_v1 = vpack.i.bf16 %v2950_v54, %v2945_v57  ;;  %v1072_v62 = vsel %vm579_vm4, %v2084_v52, %v2089_v53  ;;  %v1073_v10 = vsel %vm579_vm4, %v2085_v36, %v2090_v48  ;;  %v1076_v14 = vsel %vm579_vm4, %v2089_v53, %v2084_v52 }
 0x39f   : > { %v2098_v61 = vpop.permute.xlu1 %2097  ;;  %v2095_v11 = vunpack.i.h.bf16 %v2093_v59  ;;  %v2094_v8 = vunpack.i.l.bf16 %v2093_v59  ;;  %v1077_v15 = vsel %vm579_vm4, %v2090_v48, %v2085_v36  ;;  %v2971_v12 = vsel %vm2470_vm5, %v2840_v22, %v1072_v62 }
 0x3a0   : > { %2122 = vrot.lane.b32.xlu1 %v2121_v1, %s2233_s14  ;;  %v2100_v60 = vunpack.i.h.bf16 %v2098_v61  ;;  %v2099_v9 = vunpack.i.l.bf16 %v2098_v61  ;;  %v2976_v6 = vsel %vm2470_vm5, %v2842_v23, %v1073_v10  ;;  %v2989_v20 = vsel %vm2476_vm6, %v2844_v25, %v1076_v14 }
 0x3a1   : > { %v2141_v46 = vpack.i.bf16 %v2976_v6, %v2971_v12  ;;  %v2994_v21 = vsel %vm2476_vm6, %v2846_v26, %v1077_v15 }
 0x3a2   : > { %2117 = vrot.lane.b32.xlu0 %v2850_v37, %s2233_s14  ;;  %v1074_v33 = vsel %vm579_vm4, %v2094_v8, %v2099_v9  ;;  %v1075_v34 = vsel %vm579_vm4, %v2095_v11, %v2100_v60  ;;  %v1078_v47 = vsel %vm579_vm4, %v2099_v9, %v2094_v8  ;;  %v1079_v7 = vsel %vm579_vm4, %v2100_v60, %v2095_v11 }
 0x3a3   : > { %v3005_v17 = vsel %vm2470_vm5, %v2860_v4, %v1074_v33  ;;  %v3010_v18 = vsel %vm2470_vm5, %v2862_v56, %v1075_v34  ;;  %v2146_v19 = vpack.i.bf16 %v2994_v21, %v2989_v20  ;;  %v3020_v36 = vsel %vm2476_vm6, %v2864_v5, %v1078_v47 }
 0x3a4   : > { %2127 = vrot.lane.b32.xlu1 %v2854_v39, %s2233_s14  ;;  %v2151_v31 = vpack.i.bf16 %v3010_v18, %v3005_v17  ;;  %v3025_v52 = vsel %vm2476_vm6, %v2866_v51, %v1079_v7 }
 0x3a5   : > { %v2156_v40 = vpack.i.bf16 %v3025_v52, %v3020_v36 }
 0x3a6   : > { %2132 = vrot.lane.b32.xlu0 %v2870_v58, %s2233_s14 }
 0x3a8   : > { %2137 = vrot.lane.b32.xlu1 %v2874_v63, %s2233_s14 }
 0x3aa   : > { %2142 = vrot.lane.b32.xlu0 %v2141_v46, %s2233_s14 }
 0x3ac   : > { %2147 = vrot.lane.b32.xlu1 %v2146_v19, %s2233_s14 }
 0x3ae   : > { %2152 = vrot.lane.b32.xlu0 %v2151_v31, %s2233_s14 }
 0x3b0   : > { %2157 = vrot.lane.b32.xlu1 %v2156_v40, %s2233_s14  ;;  %s352_s14 = scalar_lea.vmem %s3343_s9, %s1695_s29 }
 0x3b2   : > { %2162 = vrot.lane.b32.xlu0 %v2101_v32, %s2234_s15 }
 0x3b4   : > { %2167 = vrot.lane.b32.xlu1 %v2106_v3, %s2234_s15 }
 0x3b6   : > { %2172 = vrot.lane.b32.xlu0 %v2111_v41, %s2234_s15 }
 0x3b8   : > { %2182 = vrot.lane.b32.xlu1 %v2121_v1, %s2234_s15 }
 0x3ba   : > { %2177 = vrot.lane.b32.xlu0 %v2850_v37, %s2234_s15  ;;  %v1293_v37 = vld [vmem:[%s3341_s7 + $0x8] sm:$0xff] }
 0x3bc   : > { %2187 = vrot.lane.b32.xlu1 %v2854_v39, %s2234_s15  ;;  %v1294_v39 = vld [vmem:[%s3341_s7 + $0x10] sm:$0xff] }
 0x3be   : > { %2192 = vrot.lane.b32.xlu0 %v2870_v58, %s2234_s15  ;;  %v1295_v58 = vld [vmem:[%s3341_s7 + $0x18] sm:$0xff] }
 0x3c0   : > { %2197 = vrot.lane.b32.xlu1 %v2874_v63, %s2234_s15  ;;  %v1281_v63 = vld [vmem:[%s3340_s6 + $0x8] sm:$0xff] }
 0x3c1   : > { %1392 = vmatprep.mubr.f32.mxu0 %v1281_v63 }
 0x3c2   : > { %2202 = vrot.lane.b32.xlu0 %v2141_v46, %s2234_s15 }
 0x3c4   : > { %2207 = vrot.lane.b32.xlu1 %v2146_v19, %s2234_s15 }
 0x3c6   : > { %2212 = vrot.lane.b32.xlu0 %v2151_v31, %s2234_s15 }
 0x3c8   : > { %2217 = vrot.lane.b32.xlu1 %v2156_v40, %s2234_s15 }
 0x3ca   : > { %1298 = vperm.xlu0 %1899, %v1292_v55  }
 0x3cc   : > { %1303 = vperm.xlu1 %1900, %v1293_v37  }
 0x3ce   : > { %1308 = vperm.xlu0 %1899, %v1294_v39  }
 0x3d0   : > { %1313 = vperm.xlu1 %1900, %v1295_v58  }
 0x408   : > { %v2103_v32 = vpop.permute.xlu0 %2102  ;;  %v2108_v3 = vpop.permute.xlu1 %2107 }
 0x409   : > { %v2105_v41 = vunpack.i.h.bf16 %v2103_v32  ;;  %v2104_v48 = vunpack.i.l.bf16 %v2103_v32  ;;  %v2110_v53 = vunpack.i.h.bf16 %v2108_v3  ;;  %v2109_v59 = vunpack.i.l.bf16 %v2108_v3 }
 0x40b   : > { %v1109_v1 = vsel %vm526_vm7, %v2110_v53, %v2105_v41  ;;  %v1108_v61 = vsel %vm526_vm7, %v2109_v59, %v2104_v48  ;;  %v1104_v62 = vsel %vm526_vm7, %v2104_v48, %v2109_v59  ;;  %v1105_v10 = vsel %vm526_vm7, %v2105_v41, %v2110_v53 }
 0x40c   : > { %v1773_v11 = vpack.c.bf16 %v1105_v10, %v1104_v62  ;;  %v1112_v8 = vsel %vm526_vm7, %v2899_v13, %v1108_v61  ;;  %v1114_v60 = vsel %vm526_vm7, %v2904_v16, %v1109_v1 }
 0x40d   : > { %v1775_v9 = vpack.c.bf16 %v1114_v60, %v1112_v8 }
 0x40e   : > { %1774 = vmatprep.subr.bf16.mxu0 %v1773_v11 }
 0x40f   : > { %1776 = vmatpush1.bf16.msra.mxu0 %v1775_v9 }
 0x410   : > { %v2113_v14 = vpop.permute.xlu0 %2112 }
 0x411   : > { %v2115_v15 = vunpack.i.h.bf16 %v2113_v14  ;;  %v2114_v33 = vunpack.i.l.bf16 %v2113_v14 }
 0x412   : > { %v2123_v34 = vpop.permute.xlu1 %2122 }
 0x413   : > { %v2125_v46 = vunpack.i.h.bf16 %v2123_v34  ;;  %v2124_v47 = vunpack.i.l.bf16 %v2123_v34 }
 0x414   : > { %v2118_v7 = vpop.permute.xlu0 %2117 }
 0x415   : > { %v2120_v19 = vunpack.i.h.bf16 %v2118_v7  ;;  %v2119_v31 = vunpack.i.l.bf16 %v2118_v7  ;;  %v1111_v40 = vsel %vm526_vm7, %v2125_v46, %v2115_v15  ;;  %v1110_v55 = vsel %vm526_vm7, %v2124_v47, %v2114_v33 }
 0x416   : > { %v1106_v37 = vsel %vm526_vm7, %v2114_v33, %v2124_v47  ;;  %v1107_v39 = vsel %vm526_vm7, %v2115_v15, %v2125_v46  ;;  %v2128_v58 = vpop.permute.xlu1 %2127  ;;  %v1116_v32 = vsel %vm526_vm7, %v2933_v35, %v1110_v55  ;;  %v1118_v3 = vsel %vm526_vm7, %v2938_v38, %v1111_v40 }
 0x417   : > { %v1777_v63 = vpack.c.bf16 %v1107_v39, %v1106_v37  ;;  %v2130_v41 = vunpack.i.h.bf16 %v2128_v58  ;;  %v2129_v48 = vunpack.i.l.bf16 %v2128_v58  ;;  %v1779_v53 = vpack.c.bf16 %v1118_v3, %v1116_v32 }
 0x418   : > { %v2133_v59 = vpop.permute.xlu0 %2132 }
 0x419   : > { %1778 = vmatprep.subr.bf16.mxu0 %v1777_v63  ;;  %v2135_v1 = vunpack.i.h.bf16 %v2133_v59  ;;  %v2134_v61 = vunpack.i.l.bf16 %v2133_v59  ;;  %v1141_v62 = vsel %vm526_vm7, %v2130_v41, %v2120_v19  ;;  %v1140_v10 = vsel %vm526_vm7, %v2129_v48, %v2119_v31 }
 0x41a   : > { %1780 = vmatpush1.bf16.msra.mxu0 %v1779_v53  ;;  %v1136_v11 = vsel %vm526_vm7, %v2119_v31, %v2129_v48  ;;  %v1137_v8 = vsel %vm526_vm7, %v2120_v19, %v2130_v41  ;;  %v2138_v60 = vpop.permute.xlu1 %2137  ;;  %v1144_v14 = vsel %vm526_vm7, %v2840_v22, %v1140_v10  ;;  %v1146_v15 = vsel %vm526_vm7, %v2842_v23, %v1141_v62 }
 0x41b   : > { %v1781_v9 = vpack.c.bf16 %v1137_v8, %v1136_v11  ;;  %v2140_v33 = vunpack.i.h.bf16 %v2138_v60  ;;  %v2139_v34 = vunpack.i.l.bf16 %v2138_v60  ;;  %v1783_v46 = vpack.c.bf16 %v1146_v15, %v1144_v14 }
 0x41c   : > { %v2143_v47 = vpop.permute.xlu0 %2142 }
 0x41d   : > { %1782 = vmatprep.subr.bf16.mxu0 %v1781_v9  ;;  %v2145_v7 = vunpack.i.h.bf16 %v2143_v47  ;;  %v2144_v31 = vunpack.i.l.bf16 %v2143_v47  ;;  %v1143_v19 = vsel %vm526_vm7, %v2140_v33, %v2135_v1  ;;  %v1142_v40 = vsel %vm526_vm7, %v2139_v34, %v2134_v61 }
 0x41e   : > { %1784 = vmatpush1.bf16.msra.mxu0 %v1783_v46  ;;  %v1138_v55 = vsel %vm526_vm7, %v2134_v61, %v2139_v34  ;;  %v1139_v37 = vsel %vm526_vm7, %v2135_v1, %v2140_v33  ;;  %v2148_v39 = vpop.permute.xlu1 %2147  ;;  %v1148_v63 = vsel %vm526_vm7, %v2860_v4, %v1142_v40  ;;  %v1150_v32 = vsel %vm526_vm7, %v2862_v56, %v1143_v19 }
 0x41f   : > { %v1785_v58 = vpack.c.bf16 %v1139_v37, %v1138_v55  ;;  %v2150_v3 = vunpack.i.h.bf16 %v2148_v39  ;;  %v2149_v41 = vunpack.i.l.bf16 %v2148_v39  ;;  %v1787_v48 = vpack.c.bf16 %v1150_v32, %v1148_v63 }
 0x420   : > { %v2153_v53 = vpop.permute.xlu0 %2152  ;;  %v1799_v32 = vpack.c.bf16 %v2904_v16, %v2899_v13  ;;  %v1809_v13 = vpack.c.bf16 %v2866_v51, %v2864_v5 }
 0x421   : > { %1786 = vmatprep.subr.bf16.mxu0 %v1785_v58  ;;  %v2155_v59 = vunpack.i.h.bf16 %v2153_v53  ;;  %v2154_v61 = vunpack.i.l.bf16 %v2153_v53  ;;  %v1173_v1 = vsel %vm526_vm7, %v2150_v3, %v2145_v7  ;;  %v1172_v62 = vsel %vm526_vm7, %v2149_v41, %v2144_v31 }
 0x422   : > { %1788 = vmatpush1.bf16.msra.mxu0 %v1787_v48  ;;  %v1168_v10 = vsel %vm526_vm7, %v2144_v31, %v2149_v41  ;;  %v1169_v11 = vsel %vm526_vm7, %v2145_v7, %v2150_v3  ;;  %v2158_v8 = vpop.permute.xlu1 %2157  ;;  %v1176_v9 = vsel %vm526_vm7, %v2971_v12, %v1172_v62  ;;  %v1178_v14 = vsel %vm526_vm7, %v2976_v6, %v1173_v1 }
 0x423   : > { %v1789_v60 = vpack.c.bf16 %v1169_v11, %v1168_v10  ;;  %v2160_v15 = vunpack.i.h.bf16 %v2158_v8  ;;  %v2159_v33 = vunpack.i.l.bf16 %v2158_v8  ;;  %v1791_v34 = vpack.c.bf16 %v1178_v14, %v1176_v9 }
 0x424   : > { %v2163_v39 = vpop.permute.xlu0 %2162  ;;  %v1797_v58 = vpack.c.bf16 %v2914_v2, %v2909_v24  ;;  %v1801_v3 = vpack.c.bf16 %v2950_v54, %v2945_v57  ;;  %v1803_v53 = vpack.c.bf16 %v2938_v38, %v2933_v35  ;;  %v1811_v38 = vpack.c.bf16 %v2862_v56, %v2860_v4 }
 0x425   : > { %1790 = vmatprep.subr.bf16.mxu0 %v1789_v60  ;;  %v1175_v46 = vsel %vm526_vm7, %v2160_v15, %v2155_v59  ;;  %v1174_v47 = vsel %vm526_vm7, %v2159_v33, %v2154_v61  ;;  %v1170_v7 = vsel %vm526_vm7, %v2154_v61, %v2159_v33  ;;  %v1171_v31 = vsel %vm526_vm7, %v2155_v59, %v2160_v15 }
 0x426   : > { %1792 = vmatpush1.bf16.msra.mxu0 %v1791_v34  ;;  %v1793_v19 = vpack.c.bf16 %v1171_v31, %v1170_v7  ;;  %v1180_v40 = vsel %vm526_vm7, %v3005_v17, %v1174_v47  ;;  %v1182_v55 = vsel %vm526_vm7, %v3010_v18, %v1175_v46  ;;  %v2168_v63 = vpop.permute.xlu1 %2167  ;;  %v1805_v59 = vpack.c.bf16 %v2846_v26, %v2844_v25 }
 0x427   : > { %v1795_v37 = vpack.c.bf16 %v1182_v55, %v1180_v40  ;;  %v1807_v61 = vpack.c.bf16 %v2842_v23, %v2840_v22  ;;  %v2165_v62 = vunpack.i.h.bf16 %v2163_v39  ;;  %v2164_v10 = vunpack.i.l.bf16 %v2163_v39 }
 0x428   : > { %1794 = vmatprep.subr.bf16.mxu0 %v1793_v19  ;;  %v2173_v41 = vpop.permute.xlu0 %2172  ;;  %v2170_v11 = vunpack.i.h.bf16 %v2168_v63  ;;  %v2169_v35 = vunpack.i.l.bf16 %v2168_v63  ;;  %v1813_v8 = vpack.c.bf16 %v2994_v21, %v2989_v20  ;;  %v1815_v4 = vpack.c.bf16 %v2976_v6, %v2971_v12 }
 0x429   : > { %v2175_v22 = vunpack.i.h.bf16 %v2173_v41  ;;  %v2174_v23 = vunpack.i.l.bf16 %v2173_v41  ;;  %v1817_v56 = vpack.c.bf16 %v3025_v52, %v3020_v36  ;;  %v1819_v55 = vpack.c.bf16 %v3010_v18, %v3005_v17 }
 0x42a   : > { %1796 = vmatpush1.bf16.msra.mxu0 %v1795_v37  ;;  %v2183_v48 = vpop.permute.xlu1 %2182  ;;  %v1205_v60 = vsel %vm708_vm8, %v2170_v11, %v2165_v62  ;;  %v1204_v9 = vsel %vm708_vm8, %v2169_v35, %v2164_v10 }
 0x42b   : > { %1798 = vmatprep.subr.bf16.mxu0 %v1797_v58  ;;  %v2185_v14 = vunpack.i.h.bf16 %v2183_v48  ;;  %v2184_v15 = vunpack.i.l.bf16 %v2183_v48  ;;  %v1209_v7 = vsel %vm529_vm9, %v2909_v24, %v1204_v9  ;;  %v1211_v31 = vsel %vm529_vm9, %v2914_v2, %v1205_v60 }
 0x42c   : > { %v3159_v1 = vpop.permute.xlu0 %2177  ;;  %v1201_v24 = vsel %vm708_vm8, %v2165_v62, %v2170_v11  ;;  %v1200_v2 = vsel %vm708_vm8, %v2164_v10, %v2169_v35  ;;  %v1821_v39 = vpack.c.bf16 %v1211_v31, %v1209_v7 }
 0x42d   : > { %v2180_v46 = vunpack.i.h.bf16 %v3159_v1  ;;  %v2179_v47 = vunpack.i.l.bf16 %v3159_v1  ;;  %v1207_v19 = vsel %vm708_vm8, %v2185_v14, %v2175_v22  ;;  %v1206_v12 = vsel %vm708_vm8, %v2184_v15, %v2174_v23 }
 0x42e   : > { %1800 = vmatpush1.bf16.msra.mxu0 %v1799_v32  ;;  %v3163_v16 = vpop.permute.xlu1 %2187  ;;  %v1215_v17 = vsel %vm529_vm9, %v2950_v54, %v1207_v19 }
 0x42f   : > { %1802 = vmatprep.subr.bf16.mxu0 %v1801_v3  ;;  %v2190_v6 = vunpack.i.h.bf16 %v3163_v16  ;;  %v2189_v40 = vunpack.i.l.bf16 %v3163_v16  ;;  %v1213_v3 = vsel %vm529_vm9, %v2945_v57, %v1206_v12  ;;  %v1202_v57 = vsel %vm708_vm8, %v2174_v23, %v2184_v15 }
 0x430   : > { %v3173_v33 = vpop.permute.xlu0 %2192  ;;  %v1825_v1 = vpack.c.bf16 %v1215_v17, %v1213_v3  ;;  %v1290_v17 = vld [vmem:[%s3340_s6 + $0x50] sm:$0xff] }
 0x431   : > { %v2195_v58 = vunpack.i.h.bf16 %v3173_v33  ;;  %v2194_v63 = vunpack.i.l.bf16 %v3173_v33  ;;  %v1237_v18 = vsel %vm708_vm8, %v2190_v6, %v2180_v46  ;;  %v1236_v41 = vsel %vm708_vm8, %v2189_v40, %v2179_v47 }
 0x432   : > { %1804 = vmatpush1.bf16.msra.mxu0 %v1803_v53  ;;  %v3175_v34 = vpop.permute.xlu1 %2197  ;;  %v1241_v16 = vsel %vm529_vm9, %v2844_v25, %v1236_v41  ;;  %v1243_v62 = vsel %vm529_vm9, %v2846_v26, %v1237_v18  ;;  %v1233_v60 = vsel %vm708_vm8, %v2180_v46, %v2190_v6  ;;  %v1232_v25 = vsel %vm708_vm8, %v2179_v47, %v2189_v40  ;;  %v1289_v18 = vld [vmem:[%s3340_s6 + $0x48] sm:$0xff]  ;;  %v1282_v41 = vld [vmem:[%s3340_s6 + $0x10] sm:$0xff] }
 0x433   : > { %1806 = vmatprep.subr.bf16.mxu0 %v1805_v59  ;;  %v2200_v48 = vunpack.i.h.bf16 %v3175_v34  ;;  %v2199_v53 = vunpack.i.l.bf16 %v3175_v34  ;;  %v1823_v59 = vpack.c.bf16 %v1201_v24, %v1200_v2  ;;  %v1829_v9 = vpack.c.bf16 %v1243_v62, %v1241_v16 }
 0x434   : > { %v2203_v37 = vpop.permute.xlu0 %2202  ;;  %v1831_v47 = vpack.c.bf16 %v1233_v60, %v1232_v25 }
 0x435   : > { %v2205_v54 = vunpack.i.h.bf16 %v2203_v37  ;;  %v1239_v10 = vsel %vm708_vm8, %v2200_v48, %v2195_v58  ;;  %v1238_v11 = vsel %vm708_vm8, %v2199_v53, %v2194_v63  ;;  %v1235_v7 = vsel %vm708_vm8, %v2195_v58, %v2200_v48  ;;  %v1285_v48 = vld [vmem:[%s3340_s6 + $0x28] sm:$0xff] }
 0x436   : > { %1808 = vmatpush1.bf16.msra.mxu0 %v1807_v61  ;;  %v2208_v32 = vpop.permute.xlu1 %2207  ;;  %v1203_v61 = vsel %vm708_vm8, %v2175_v22, %v2185_v14  ;;  %v1245_v15 = vsel %vm529_vm9, %v2864_v5, %v1238_v11  ;;  %v1247_v33 = vsel %vm529_vm9, %v2866_v51, %v1239_v10  ;;  %v1234_v5 = vsel %vm708_vm8, %v2194_v63, %v2199_v53  ;;  %v1288_v53 = vld [vmem:[%s3340_s6 + $0x40] sm:$0xff] }
 0x437   : > { %1810 = vmatprep.subr.bf16.mxu0 %v1809_v13  ;;  %v2204_v13 = vunpack.i.l.bf16 %v2203_v37  ;;  %v2210_v35 = vunpack.i.h.bf16 %v2208_v32  ;;  %v1827_v22 = vpack.c.bf16 %v1203_v61, %v1202_v57  ;;  %v1833_v31 = vpack.c.bf16 %v1247_v33, %v1245_v15 }
 0x438   : > { %v1835_v40 = vpack.c.bf16 %v1235_v7, %v1234_v5 }
 0x439   : > { %v1269_v34 = vsel %vm708_vm8, %v2210_v35, %v2205_v54 }
 0x43a   : > { %1812 = vmatpush1.bf16.msra.mxu0 %v1811_v38  ;;  %v2209_v38 = vunpack.i.l.bf16 %v2208_v32  ;;  %v2218_v23 = vpop.permute.xlu1 %2217  ;;  %v1275_v19 = vsel %vm529_vm9, %v2994_v21, %v1269_v34 }
 0x43b   : > { %1814 = vmatprep.subr.bf16.mxu0 %v1813_v8  ;;  %v2213_v8 = vpop.permute.xlu0 %2212  ;;  %v2219_v46 = vunpack.i.l.bf16 %v2218_v23 }
 0x43c   : > { %v2215_v26 = vunpack.i.h.bf16 %v2213_v8  ;;  %v2214_v14 = vunpack.i.l.bf16 %v2213_v8  ;;  %v1264_v24 = vsel %vm708_vm8, %v2204_v13, %v2209_v38 }
 0x43e   : > { %1816 = vmatpush1.bf16.msra.mxu0 %v1815_v4  ;;  %v1268_v4 = vsel %vm708_vm8, %v2209_v38, %v2204_v13  ;;  %v1270_v6 = vsel %vm708_vm8, %v2219_v46, %v2214_v14  ;;  %v1266_v32 = vsel %vm708_vm8, %v2214_v14, %v2219_v46 }
 0x43f   : > { %1818 = vmatprep.subr.bf16.mxu0 %v1817_v56  ;;  %v2220_v56 = vunpack.i.h.bf16 %v2218_v23  ;;  %v1273_v51 = vsel %vm529_vm9, %v2989_v20, %v1268_v4  ;;  %v1280_v20 = vld [vmem:[%s3340_s6] sm:$0xff]  ;;  %v1277_v21 = vsel %vm529_vm9, %v3020_v36, %v1270_v6  ;;  %v1287_v36 = vld [vmem:[%s3340_s6 + $0x38] sm:$0xff] }
 0x440   : > { %v1837_v2 = vpack.c.bf16 %v1275_v19, %v1273_v51 }
 0x441   : > { %v1271_v12 = vsel %vm708_vm8, %v2220_v56, %v2215_v26  ;;  %v1267_v63 = vsel %vm708_vm8, %v2215_v26, %v2220_v56 }
 0x442   : > { %1820 = vmatpush1.bf16.msra.mxu0 %v1819_v55  ;;  %v1265_v55 = vsel %vm708_vm8, %v2205_v54, %v2210_v35  ;;  %v1279_v37 = vsel %vm529_vm9, %v3025_v52, %v1271_v12  ;;  %v1843_v52 = vpack.c.bf16 %v1267_v63, %v1266_v32 }
 0x443   : > { %1822 = vmatprep.subr.bf16.mxu0 %v1821_v39  ;;  %v1284_v39 = vld [vmem:[%s3340_s6 + $0x20] sm:$0xff]  ;;  %v1839_v58 = vpack.c.bf16 %v1265_v55, %v1264_v24  ;;  %v1841_v3 = vpack.c.bf16 %v1279_v37, %v1277_v21 }
 0x446   : > { %1824 = vmatpush1.bf16.msra.mxu0 %v1823_v59  ;;  %v1291_v59 = vld [vmem:[%s3340_s6 + $0x58] sm:$0xff] }
 0x447   : > { %1826 = vmatprep.subr.bf16.mxu0 %v1825_v1 }
 0x449   : > { %v1299_v61 = vpop.permute.xlu0 %1298 }
 0x44a   : > { %1828 = vmatpush1.bf16.msra.mxu0 %v1827_v22 }
 0x44b   : > { %1830 = vmatprep.subr.bf16.mxu0 %v1829_v9  ;;  %v1304_v16 = vpop.permute.xlu1 %1303 }
 0x44d   : > { %v1309_v22 = vpop.permute.xlu0 %1308 }
 0x44e   : > { %1832 = vmatpush1.bf16.msra.mxu0 %v1831_v47 }
 0x44f   : > { %1834 = vmatprep.subr.bf16.mxu0 %v1833_v31 }
 0x452   : > { %1836 = vmatpush1.bf16.msra.mxu0 %v1835_v40 }
 0x453   : > { %1838 = vmatprep.subr.bf16.mxu0 %v1837_v2 }
 0x455   : > { %1393 = vmatmul.mubr.f32.vlgmr.msra.gmra.mrb[8].mxu0 %v1280_v20 }
 0x456   : > { %1840 = vmatpush1.bf16.msra.mxu0 %v1839_v58  ;;  %1398 = vmatprep.mubr.f32.mxu0 %v1284_v39 }
 0x457   : > { %1842 = vmatprep.subr.bf16.mxu0 %v1841_v3 }
 0x459   : > { %1399 = vmatmul.mubr.f32.gmra.mrb[10].mxu0 %v1283_v50 }
 0x45a   : > { %1844 = vmatpush1.bf16.msra.mxu0 %v1843_v52  ;;  %1404 = vmatprep.mubr.f32.mxu0 %v1287_v36 }
 0x45d   : > { %1405 = vmatmul.mubr.f32.gmra.mrb[12].mxu0 %v1286_v49 }
 0x45e   : > { %1410 = vmatprep.mubr.f32.mxu0 %v1290_v17 }
 0x461   : > { %1411 = vmatmul.mubr.f32.gmra.mrb[14].mxu0 %v1289_v18 }
 0x462   : > { %1481 = vmatprep.mubr.f32.mxu0 %v2229_v0 }
 0x465   : > { %1687 = vmatmul.mubr.msk.f32.vlgmr.msra.gmra.mrb[8].mxu0 %vm825_vm10, %v1282_v41 }
 0x466   : > { %1487 = vmatprep.mubr.f32.mxu0 %v2229_v0 }
 0x469   : > { %1688 = vmatmul.mubr.msk.f32.gmra.mrb[10].mxu0 %vm825_vm10, %v1285_v48 }
 0x46a   : > { %1493 = vmatprep.mubr.f32.mxu0 %v2229_v0 }
 0x46d   : > { %1689 = vmatmul.mubr.msk.f32.gmra.mrb[12].mxu0 %vm825_vm10, %v1288_v53 }
 0x46e   : > { %1499 = vmatprep.mubr.f32.mxu0 %v2229_v0 }
 0x471   : > { %1690 = vmatmul.mubr.msk.f32.gmra.mrb[14].mxu0 %vm825_vm10, %v1291_v59 }
 0x538   : > { %v1483_v57 = vpop.f32.mrb[8].mxu0 }
 0x539   : > { %v1861_v1 = vadd.f32 %v1483_v57, %v1299_v61  ;;  %v1485_v54 = vpop.f32.mrb[9].mxu0 }
 0x53a   : > { %v1862_v13 = vadd.f32 %v1485_v54, %v1299_v61 }
 0x53b   : > { %v1506_v10 = vadd.f32 %v1861_v1, %v2327_v27  ;;  %v1314_v27 = vpop.permute.xlu1 %1313 }
 0x53c   : > { %v1489_v62 = vpop.f32.mrb[10].mxu0  ;;  %v1507_v38 = vadd.f32 %v1862_v13, %v2331_v29 }
 0x53d   : > { %v1863_v11 = vadd.f32 %v1489_v62, %v1304_v16  ;;  %v1491_v35 = vpop.f32.mrb[11].mxu0  ;;  %v1514_v25 = vmax.f32 %v1506_v10, 0.0 }
 0x53e   : > { %v1864_v0 = vadd.f32 %v1491_v35, %v1304_v16  ;;  %v1515_v15 = vmax.f32 %v1507_v38, 0.0 }
 0x53f   : > { %v1508_v8 = vadd.f32 %v1863_v11, %v2329_v28 }
 0x540   : > { %v1509_v23 = vadd.f32 %v1864_v0, %v2333_v30  ;;  %v1495_v60 = vpop.f32.mrb[12].mxu0 }
 0x541   : > { %v1516_v9 = vmax.f32 %v1508_v8, 0.0  ;;  %v1865_v26 = vadd.f32 %v1495_v60, %v1309_v22  ;;  %v1497_v14 = vpop.f32.mrb[13].mxu0 }
 0x542   : > { %v1517_v33 = vmax.f32 %v1509_v23, 0.0  ;;  %v1866_v34 = vadd.f32 %v1497_v14, %v1309_v22 }
 0x543   : > { %v1847_v4 = vpack.c.bf16 %v1516_v9, %v1514_v25  ;;  %v1510_v29 = vadd.f32 %v1865_v26, %v2347_v42  ;;  %v1522_v42 = vld [vmem:[%s3342_s8] sm:$0xff] }
 0x544   : > { %v1501_v56 = vpop.f32.mrb[14].mxu0  ;;  %v1845_v46 = vpack.c.bf16 %v1517_v33, %v1515_v15  ;;  %v1511_v28 = vadd.f32 %v1866_v34, %v2351_v44  ;;  %v1524_v44 = vld [vmem:[%s347_s17 + $0x8] sm:$0xff] }
 0x545   : > { %v1867_v47 = vadd.f32 %v1501_v56, %v1314_v27  ;;  %v1503_v7 = vpop.f32.mrb[15].mxu0  ;;  %v1518_v51 = vmax.f32 %v1510_v29, 0.0 }
 0x546   : > { %v1868_v30 = vadd.f32 %v1503_v7, %v1314_v27  ;;  %1846 = vmatprep.subr.bf16.mxu1 %v1845_v46  ;;  %v1519_v12 = vmax.f32 %v1511_v28, 0.0 }
 0x547   : > { %v1512_v5 = vadd.f32 %v1867_v47, %v2349_v43  ;;  %1848 = vmatpush1.bf16.msra.mxu1 %v1847_v4  ;;  %v1523_v43 = vld [vmem:[%s347_s17] sm:$0xff] }
 0x548   : > { %v1513_v31 = vadd.f32 %v1868_v30, %v2353_v45 }
 0x549   : > { %v1520_v19 = vmax.f32 %v1512_v5, 0.0 }
 0x54a   : > { %v1521_v6 = vmax.f32 %v1513_v31, 0.0 }
 0x54b   : > { %v1851_v40 = vpack.c.bf16 %v1520_v19, %v1518_v51 }
 0x54c   : > { %v1849_v55 = vpack.c.bf16 %v1521_v6, %v1519_v12 }
 0x54e   : > { %1850 = vmatprep.subr.bf16.mxu1 %v1849_v55 }
 0x54f   : > { %1852 = vmatpush1.bf16.msra.mxu1 %v1851_v40 }
 0x552   : > { %1691 = vmatmul.mubr.msk.f32.vlgmr.msra.gmra.mrb[8].mxu1 %vm825_vm10, %v1522_v42 }
 0x625   : > { %v1594_v45 = vpop.f32.mrb[8].mxu1 }
 0x626   : > { %v1595_v24 = vadd.f32 %v1594_v45, %v1523_v43  ;;  %v1596_v2 = vpop.f32.mrb[9].mxu1 }
 0x627   : > { %v1597_v20 = vadd.f32 %v1596_v2, %v1524_v44 }
 0x628   : > { %1599 = vst [vmem:[%s352_s14] sm:$0xff] %v1595_v24 }
 0x629   : > { %1600 = vst [vmem:[%s352_s14 + $0x8] sm:$0xff] %v1597_v20 }
 0x62a PF: > { %s19_s30 = sadd.s32 1, %s2227_s30  }
 0x62b   : > { %p16_p4 = scmp.ge.s32.totalorder %s19_s30, 4  }
 0x62d   :  { %18 = sbr.rel (!%p16_p4) target bundleno = 1 (0x1), region = 89 }

</bundles_post_ra>
